<compile_context>
chip_gen: v7x
topology: tpu7x:2x2x1
jax: 0.10.0
libtpu: 0.0.40
codegen_flags: <defaults>
</compile_context>

<pallas_src>
import numpy as np
import jax
import jax.numpy as jnp
from jax.experimental import pallas as pl
from jax.experimental.pallas import tpu as pltpu


# --------------------- JPEG constants (identical to the PyTorch initializers)

_Y_TABLE = np.array(
    [[16, 11, 10, 16, 24, 40, 51, 61],
     [12, 12, 14, 19, 26, 58, 60, 55],
     [14, 13, 16, 24, 40, 57, 69, 56],
     [14, 17, 22, 29, 51, 87, 80, 62],
     [18, 22, 37, 56, 68, 109, 103, 77],
     [24, 35, 55, 64, 81, 104, 113, 92],
     [49, 64, 78, 87, 103, 121, 120, 101],
     [72, 92, 95, 98, 112, 100, 103, 99]], dtype=np.float32).T

_C_TABLE = np.full((8, 8), 99.0, dtype=np.float32)
_C_TABLE[:4, :4] = np.array([[17, 18, 24, 47], [18, 21, 26, 66],
                             [24, 26, 56, 99], [47, 66, 99, 99]],
                            dtype=np.float32).T


def _dct8_matrix():
    # A[u, x] = 0.5 * alpha[u] * cos((2x+1) u pi / 16).
    # Then  D = A @ (B - 128) @ A.T     == dct_8x8 of the reference
    #       R = A.T @ DQ @ A + 128      == idct_8x8 of the reference
    a = np.zeros((8, 8), dtype=np.float64)
    alpha = np.array([1.0 / np.sqrt(2.0)] + [1.0] * 7)
    for u in range(8):
        for x in range(8):
            a[u, x] = 0.5 * alpha[u] * np.cos((2 * x + 1) * u * np.pi / 16.0)
    return a.astype(np.float32)


_A8 = _dct8_matrix()


def quality_to_factor(quality):
    if quality < 50:
        q = 5000.0 / quality
    else:
        q = 200.0 - quality * 2
    return q / 100.0


def _pick_tile(dim, target, quantum):
    """Largest multiple of `quantum` that divides `dim` and is <= `target`,
    falling back to the full dim (always a legal BlockSpec block)."""
    if dim <= target:
        return dim
    t = (target // quantum) * quantum
    while t >= quantum:
        if dim % t == 0:
            return t
        t -= quantum
    return dim


def _kron_eye(m, reps):
    return np.kron(np.eye(reps, dtype=np.float32), m).astype(np.float32)


# ------------------------------------------------------------ Pallas kernels

def _rgb2ycbcr_ds_kernel(x_ref, pr_ref, pc_ref, y_ref, cb_ref, cr_ref):
    # x_ref: (1, 3, TH, TW) RGB in [0,1]; y: (1, TH, TW) full-res,
    # cb/cr: (1, TH/2, TW/2) with the 2x2 average pool fused in (MXU matmuls).
    r = x_ref[0, 0, :, :] * 255.0
    g = x_ref[0, 1, :, :] * 255.0
    b = x_ref[0, 2, :, :] * 255.0
    y_ref[0, :, :] = 0.299 * r + 0.587 * g + 0.114 * b
    cb = -0.168736 * r - 0.331264 * g + 0.5 * b + 128.0
    cr = 0.5 * r - 0.418688 * g - 0.081312 * b + 128.0
    pr = pr_ref[...]
    pc = pc_ref[...]
    cb_ref[0, :, :] = jnp.dot(
        jnp.dot(pr, cb, preferred_element_type=jnp.float32), pc,
        preferred_element_type=jnp.float32)
    cr_ref[0, :, :] = jnp.dot(
        jnp.dot(pr, cr, preferred_element_type=jnp.float32), pc,
        preferred_element_type=jnp.float32)


def _jpeg_core_kernel(x_ref, ar_ref, art_ref, ac_ref, act_ref,
                      inv_ref, tab_ref, o_ref):
    # x_ref: (1, TR, TC) plane tile.  Separable per-8x8-block transforms via
    # block-diagonal matrices:  D = BD(A) X BD(A)^T,  R = BD(A)^T DQ BD(A).
    x = x_ref[0, :, :] - 128.0
    d = jnp.dot(ar_ref[...], x, preferred_element_type=jnp.float32)
    d = jnp.dot(d, act_ref[...], preferred_element_type=jnp.float32)
    q = d * inv_ref[...]                      # / (table * factor)
    rq = jnp.round(q)
    q = rq + (q - rq) ** 3                    # diff_round
    dq = q * tab_ref[...]                     # * (table * factor)
    out = jnp.dot(art_ref[...], dq, preferred_element_type=jnp.float32)
    out = jnp.dot(out, ac_ref[...], preferred_element_type=jnp.float32)
    o_ref[0, :, :] = out + 128.0


def _ycbcr2rgb_us_kernel(y_ref, cb_ref, cr_ref, ur_ref, uc_ref, o_ref):
    # y: (1, TH, TW); cb/cr: (1, TH/2, TW/2) nearest-upsampled in-kernel via
    # 0/1 repeat matrices; o: (1, 3, TH, TW) RGB in [0, 1].
    y = y_ref[0, :, :]
    ur = ur_ref[...]
    uc = uc_ref[...]
    cb = jnp.dot(jnp.dot(ur, cb_ref[0, :, :], preferred_element_type=jnp.float32),
                 uc, preferred_element_type=jnp.float32) - 128.0
    cr = jnp.dot(jnp.dot(ur, cr_ref[0, :, :], preferred_element_type=jnp.float32),
                 uc, preferred_element_type=jnp.float32) - 128.0
    r = y + 1.402 * cr
    g = y - 0.344136 * cb - 0.714136 * cr
    b = y + 1.772 * cb
    inv255 = 1.0 / 255.0
    o_ref[0, 0, :, :] = jnp.minimum(255.0, jnp.maximum(0.0, r)) * inv255
    o_ref[0, 1, :, :] = jnp.minimum(255.0, jnp.maximum(0.0, g)) * inv255
    o_ref[0, 2, :, :] = jnp.minimum(255.0, jnp.maximum(0.0, b)) * inv255


# ---------------------------------------------------------------- wrappers

_PAR3 = pltpu.CompilerParams(dimension_semantics=("parallel",) * 3)


def _rgb_to_ycbcr_ds(x):
    n, _, h, w = x.shape
    th = _pick_tile(h, 256, 16)     # th/2 stays a multiple of 8 (or full)
    tw = _pick_tile(w, 512, 256)    # tw/2 stays a multiple of 128 (or full)
    pr = jnp.asarray(0.5 * np.kron(np.eye(th // 2, dtype=np.float32),
                                   np.ones((1, 2), np.float32)))
    pc = jnp.asarray(0.5 * np.kron(np.eye(tw // 2, dtype=np.float32),
                                   np.ones((2, 1), np.float32)))
    return pl.pallas_call(
        _rgb2ycbcr_ds_kernel,
        out_shape=(jax.ShapeDtypeStruct((n, h, w), jnp.float32),
                   jax.ShapeDtypeStruct((n, h // 2, w // 2), jnp.float32),
                   jax.ShapeDtypeStruct((n, h // 2, w // 2), jnp.float32)),
        grid=(n, h // th, w // tw),
        in_specs=[
            pl.BlockSpec((1, 3, th, tw), lambda b, i, j: (b, 0, i, j)),
            pl.BlockSpec((th // 2, th), lambda b, i, j: (0, 0)),
            pl.BlockSpec((tw, tw // 2), lambda b, i, j: (0, 0)),
        ],
        out_specs=[
            pl.BlockSpec((1, th, tw), lambda b, i, j: (b, i, j)),
            pl.BlockSpec((1, th // 2, tw // 2), lambda b, i, j: (b, i, j)),
            pl.BlockSpec((1, th // 2, tw // 2), lambda b, i, j: (b, i, j)),
        ],
        compiler_params=_PAR3,
    )(x, pr, pc)


def _jpeg_core(plane, table, factor):
    n, hc, wc = plane.shape
    tr = _pick_tile(hc, 256, 8)
    tc = _pick_tile(wc, 256, 128)
    a_r = _kron_eye(_A8, tr // 8)           # (tr, tr) block-diag of A
    a_c = _kron_eye(_A8, tc // 8)           # (tc, tc) block-diag of A
    qt = (table * factor).astype(np.float32)
    inv_t = np.tile(1.0 / qt, (tr // 8, tc // 8)).astype(np.float32)
    tab_t = np.tile(qt, (tr // 8, tc // 8)).astype(np.float32)
    return pl.pallas_call(
        _jpeg_core_kernel,
        out_shape=jax.ShapeDtypeStruct((n, hc, wc), jnp.float32),
        grid=(n, hc // tr, wc // tc),
        in_specs=[
            pl.BlockSpec((1, tr, tc), lambda b, i, j: (b, i, j)),
            pl.BlockSpec((tr, tr), lambda b, i, j: (0, 0)),   # BD(A)   rows
            pl.BlockSpec((tr, tr), lambda b, i, j: (0, 0)),   # BD(A)^T rows
            pl.BlockSpec((tc, tc), lambda b, i, j: (0, 0)),   # BD(A)   cols
            pl.BlockSpec((tc, tc), lambda b, i, j: (0, 0)),   # BD(A)^T cols
            pl.BlockSpec((tr, tc), lambda b, i, j: (0, 0)),   # 1/(table*factor)
            pl.BlockSpec((tr, tc), lambda b, i, j: (0, 0)),   # (table*factor)
        ],
        out_specs=pl.BlockSpec((1, tr, tc), lambda b, i, j: (b, i, j)),
        compiler_params=_PAR3,
    )(plane, jnp.asarray(a_r), jnp.asarray(a_r.T.copy()),
      jnp.asarray(a_c), jnp.asarray(a_c.T.copy()),
      jnp.asarray(inv_t), jnp.asarray(tab_t))


def _ycbcr_us_to_rgb(y, cb, cr):
    n, h, w = y.shape
    th = _pick_tile(h, 256, 16)
    tw = _pick_tile(w, 512, 256)
    ur = jnp.asarray(np.kron(np.eye(th // 2, dtype=np.float32),
                             np.ones((2, 1), np.float32)))
    uc = jnp.asarray(np.kron(np.eye(tw // 2, dtype=np.float32),
                             np.ones((1, 2), np.float32)))
    return pl.pallas_call(
        _ycbcr2rgb_us_kernel,
        out_shape=jax.ShapeDtypeStruct((n, 3, h, w), jnp.float32),
        grid=(n, h // th, w // tw),
        in_specs=[
            pl.BlockSpec((1, th, tw), lambda b, i, j: (b, i, j)),
            pl.BlockSpec((1, th // 2, tw // 2), lambda b, i, j: (b, i, j)),
            pl.BlockSpec((1, th // 2, tw // 2), lambda b, i, j: (b, i, j)),
            pl.BlockSpec((th, th // 2), lambda b, i, j: (0, 0)),
            pl.BlockSpec((tw // 2, tw), lambda b, i, j: (0, 0)),
        ],
        out_specs=pl.BlockSpec((1, 3, th, tw), lambda b, i, j: (b, 0, i, j)),
        compiler_params=_PAR3,
    )(y, cb, cr, ur, uc)


def diff_jpeg(x, height, width, quality=80):
    """DiffJPEG.forward: x (N, 3, H, W) float32 RGB in [0, 1] -> same shape."""
    if height % 16 != 0 or width % 16 != 0:
        # TODO(synk): reference assumes H/W multiples of 16 (8x8 blocks after
        # 2x chroma subsampling); pad/crop variants are not implemented here.
        raise ValueError("height and width must be multiples of 16")
    # NOTE: quality=100 -> factor=0 -> division by zero, same as the reference.
    factor = quality_to_factor(quality)
    y, cb, cr = _rgb_to_ycbcr_ds(x)
    y = _jpeg_core(y, _Y_TABLE, factor)
    cb = _jpeg_core(cb, _C_TABLE, factor)
    cr = _jpeg_core(cr, _C_TABLE, factor)
    return _ycbcr_us_to_rgb(y, cb, cr)


# ------------------------------------------------- pure-JAX reference (test)

def _reference(x, height, width, quality):
    n = x.shape[0]
    factor = quality_to_factor(quality)
    a = jnp.asarray(_A8)
    hi = jax.lax.Precision.HIGHEST

    r = x[:, 0] * 255.0
    g = x[:, 1] * 255.0
    b = x[:, 2] * 255.0
    y = 0.299 * r + 0.587 * g + 0.114 * b
    cb = -0.168736 * r - 0.331264 * g + 0.5 * b + 128.0
    cr = 0.5 * r - 0.418688 * g - 0.081312 * b + 128.0
    cb = cb.reshape(n, height // 2, 2, width // 2, 2).mean(axis=(2, 4))
    cr = cr.reshape(n, height // 2, 2, width // 2, 2).mean(axis=(2, 4))

    def core(p, table):
        nb, h, w = p.shape
        blk = p.reshape(nb, h // 8, 8, w // 8, 8)
        d = jnp.einsum("ux,nrxcy,vy->nrucv", a, blk - 128.0, a, precision=hi)
        t = (jnp.asarray(table) * factor)[None, None, :, None, :]
        q = d / t
        rq = jnp.round(q)
        q = rq + (q - rq) ** 3
        dq = q * t
        out = jnp.einsum("xu,nrxcy,yv->nrucv", a, dq, a, precision=hi) + 128.0
        return out.reshape(nb, h, w)

    y = core(y, _Y_TABLE)
    cb = core(cb, _C_TABLE)
    cr = core(cr, _C_TABLE)

    cb = jnp.repeat(jnp.repeat(cb, 2, axis=1), 2, axis=2) - 128.0
    cr = jnp.repeat(jnp.repeat(cr, 2, axis=1), 2, axis=2) - 128.0
    r = y + 1.402 * cr
    g = y - 0.344136 * cb - 0.714136 * cr
    b = y + 1.772 * cb
    rgb = jnp.stack([r, g, b], axis=1)
    return jnp.clip(rgb, 0.0, 255.0) / 255.0


if __name__ == "__main__":
    key = jax.random.PRNGKey(0)
    N, C, H, W = 2, 3, 16, 16          # H, W must be multiples of 16
    x = jax.random.uniform(key, (N, C, H, W), dtype=jnp.float32)

    fn = jax.jit(diff_jpeg, static_argnames=("height", "width", "quality"))
    out = jax.block_until_ready(fn(x, height=H, width=W, quality=80))

    assert out.shape == (N, C, H, W)
    assert out.dtype == jnp.float32
    assert bool(jnp.all(jnp.isfinite(out)))
    assert bool(jnp.all((out >= 0.0) & (out <= 1.0)))

    ref = jax.block_until_ready(_reference(x, H, W, 80))
    err = float(jnp.max(jnp.abs(out - ref)))
    assert err < 0.1, f"mismatch vs pure-JAX reference: max abs err {err}"

    print("KERNEL_OK")
</pallas_src>

<mosaic_0001>
module attributes {stable_mosaic.version = 11 : i64} {
  func.func @_jpeg_core_kernel(%arg0: i32, %arg1: i32, %arg2: i32, %arg3: memref<1x8x8xf32, #tpu.memory_space<vmem>>, %arg4: memref<8x8xf32, #tpu.memory_space<vmem>>, %arg5: memref<8x8xf32, #tpu.memory_space<vmem>>, %arg6: memref<8x8xf32, #tpu.memory_space<vmem>>, %arg7: memref<8x8xf32, #tpu.memory_space<vmem>>, %arg8: memref<8x8xf32, #tpu.memory_space<vmem>>, %arg9: memref<8x8xf32, #tpu.memory_space<vmem>>, %arg10: memref<1x8x8xf32, #tpu.memory_space<vmem>>) attributes {dimension_semantics = [#tpu.dimension_semantics<parallel>, #tpu.dimension_semantics<parallel>, #tpu.dimension_semantics<parallel>], iteration_bounds = array<i64: 2, 1, 1>, scalar_prefetch = 0 : i64, scratch_operands = 0 : i64, tpu.core_type = #tpu.core_type<tc>, window_params = [{transform_indices = @transform_0, window_bounds = array<i64: 1, 8, 8>}, {pipeline_mode = #tpu.pipeline_mode<synchronous>, transform_indices = @transform_1, window_bounds = array<i64: 8, 8>}, {pipeline_mode = #tpu.pipeline_mode<synchronous>, transform_indices = @transform_2, window_bounds = array<i64: 8, 8>}, {pipeline_mode = #tpu.pipeline_mode<synchronous>, transform_indices = @transform_3, window_bounds = array<i64: 8, 8>}, {pipeline_mode = #tpu.pipeline_mode<synchronous>, transform_indices = @transform_4, window_bounds = array<i64: 8, 8>}, {pipeline_mode = #tpu.pipeline_mode<synchronous>, transform_indices = @transform_5, window_bounds = array<i64: 8, 8>}, {pipeline_mode = #tpu.pipeline_mode<synchronous>, transform_indices = @transform_6, window_bounds = array<i64: 8, 8>}, {transform_indices = @transform_7, window_bounds = array<i64: 1, 8, 8>}]} {
    %c0 = arith.constant 0 : index
    %c0_0 = arith.constant 0 : index
    %c0_1 = arith.constant 0 : index
    %0 = vector.load %arg3[%c0, %c0_0, %c0_1] : memref<1x8x8xf32, #tpu.memory_space<vmem>>, vector<1x8x8xf32>
    %1 = vector.shape_cast %0 : vector<1x8x8xf32> to vector<8x8xf32>
    %cst = arith.constant 1.280000e+02 : f32
    %2 = vector.broadcast %cst : f32 to vector<8x8xf32>
    %3 = arith.subf %1, %2 : vector<8x8xf32>
    %c0_2 = arith.constant 0 : index
    %c0_3 = arith.constant 0 : index
    %4 = vector.load %arg4[%c0_2, %c0_3] : memref<8x8xf32, #tpu.memory_space<vmem>>, vector<8x8xf32>
    %cst_4 = arith.constant dense<0.000000e+00> : vector<8x8xf32>
    %5 = tpu.matmul %4, %3, %cst_4 {dimension_numbers = #tpu.dot_dimension_numbers<[1], [0], [0], [1], [0, 0, 1, 1], [], []>} : vector<8x8xf32>, vector<8x8xf32>, vector<8x8xf32> -> vector<8x8xf32>
    %c0_5 = arith.constant 0 : index
    %c0_6 = arith.constant 0 : index
    %6 = vector.load %arg7[%c0_5, %c0_6] : memref<8x8xf32, #tpu.memory_space<vmem>>, vector<8x8xf32>
    %cst_7 = arith.constant dense<0.000000e+00> : vector<8x8xf32>
    %7 = tpu.matmul %5, %6, %cst_7 {dimension_numbers = #tpu.dot_dimension_numbers<[1], [0], [0], [1], [0, 0, 1, 1], [], []>} : vector<8x8xf32>, vector<8x8xf32>, vector<8x8xf32> -> vector<8x8xf32>
    %c0_8 = arith.constant 0 : index
    %c0_9 = arith.constant 0 : index
    %8 = vector.load %arg8[%c0_8, %c0_9] : memref<8x8xf32, #tpu.memory_space<vmem>>, vector<8x8xf32>
    %9 = arith.mulf %7, %8 : vector<8x8xf32>
    %10 = math.roundeven %9 : vector<8x8xf32>
    %11 = arith.subf %9, %10 : vector<8x8xf32>
    %12 = arith.mulf %11, %11 : vector<8x8xf32>
    %13 = arith.mulf %11, %12 : vector<8x8xf32>
    %14 = arith.addf %10, %13 : vector<8x8xf32>
    %c0_10 = arith.constant 0 : index
    %c0_11 = arith.constant 0 : index
    %15 = vector.load %arg9[%c0_10, %c0_11] : memref<8x8xf32, #tpu.memory_space<vmem>>, vector<8x8xf32>
    %16 = arith.mulf %14, %15 : vector<8x8xf32>
    %c0_12 = arith.constant 0 : index
    %c0_13 = arith.constant 0 : index
    %17 = vector.load %arg5[%c0_12, %c0_13] : memref<8x8xf32, #tpu.memory_space<vmem>>, vector<8x8xf32>
    %cst_14 = arith.constant dense<0.000000e+00> : vector<8x8xf32>
    %18 = tpu.matmul %17, %16, %cst_14 {dimension_numbers = #tpu.dot_dimension_numbers<[1], [0], [0], [1], [0, 0, 1, 1], [], []>} : vector<8x8xf32>, vector<8x8xf32>, vector<8x8xf32> -> vector<8x8xf32>
    %c0_15 = arith.constant 0 : index
    %c0_16 = arith.constant 0 : index
    %19 = vector.load %arg6[%c0_15, %c0_16] : memref<8x8xf32, #tpu.memory_space<vmem>>, vector<8x8xf32>
    %cst_17 = arith.constant dense<0.000000e+00> : vector<8x8xf32>
    %20 = tpu.matmul %18, %19, %cst_17 {dimension_numbers = #tpu.dot_dimension_numbers<[1], [0], [0], [1], [0, 0, 1, 1], [], []>} : vector<8x8xf32>, vector<8x8xf32>, vector<8x8xf32> -> vector<8x8xf32>
    %cst_18 = arith.constant 1.280000e+02 : f32
    %21 = vector.broadcast %cst_18 : f32 to vector<8x8xf32>
    %22 = arith.addf %20, %21 : vector<8x8xf32>
    %c0_19 = arith.constant 0 : index
    %c0_20 = arith.constant 0 : index
    %c0_21 = arith.constant 0 : index
    %23 = vector.load %arg10[%c0_19, %c0_20, %c0_21] : memref<1x8x8xf32, #tpu.memory_space<vmem>>, vector<1x8x8xf32>
    %24 = vector.shape_cast %23 : vector<1x8x8xf32> to vector<8x8xf32>
    %25 = vector.shape_cast %22 : vector<8x8xf32> to vector<1x8x8xf32>
    tpu.vector_store %arg10[%c0_19, %c0_20, %c0_21], %25 {strides = array<i32>} : memref<1x8x8xf32, #tpu.memory_space<vmem>>, vector<1x8x8xf32>,
    return
  }
  func.func @transform_0(%arg0: i32, %arg1: i32, %arg2: i32) -> (i32, i32, i32) {
    %c0_i32 = arith.constant 0 : i32
    return %arg0, %arg1, %arg2 : i32, i32, i32
  }
  func.func @transform_1(%arg0: i32, %arg1: i32, %arg2: i32) -> (i32, i32) {
    %c0_i32 = arith.constant 0 : i32
    %c0_i32_0 = arith.constant 0 : i32
    %c0_i32_1 = arith.constant 0 : i32
    return %c0_i32, %c0_i32_0 : i32, i32
  }
  func.func @transform_2(%arg0: i32, %arg1: i32, %arg2: i32) -> (i32, i32) {
    %c0_i32 = arith.constant 0 : i32
    %c0_i32_0 = arith.constant 0 : i32
    %c0_i32_1 = arith.constant 0 : i32
    return %c0_i32, %c0_i32_0 : i32, i32
  }
  func.func @transform_3(%arg0: i32, %arg1: i32, %arg2: i32) -> (i32, i32) {
    %c0_i32 = arith.constant 0 : i32
    %c0_i32_0 = arith.constant 0 : i32
    %c0_i32_1 = arith.constant 0 : i32
    return %c0_i32, %c0_i32_0 : i32, i32
  }
  func.func @transform_4(%arg0: i32, %arg1: i32, %arg2: i32) -> (i32, i32) {
    %c0_i32 = arith.constant 0 : i32
    %c0_i32_0 = arith.constant 0 : i32
    %c0_i32_1 = arith.constant 0 : i32
    return %c0_i32, %c0_i32_0 : i32, i32
  }
  func.func @transform_5(%arg0: i32, %arg1: i32, %arg2: i32) -> (i32, i32) {
    %c0_i32 = arith.constant 0 : i32
    %c0_i32_0 = arith.constant 0 : i32
    %c0_i32_1 = arith.constant 0 : i32
    return %c0_i32, %c0_i32_0 : i32, i32
  }
  func.func @transform_6(%arg0: i32, %arg1: i32, %arg2: i32) -> (i32, i32) {
    %c0_i32 = arith.constant 0 : i32
    %c0_i32_0 = arith.constant 0 : i32
    %c0_i32_1 = arith.constant 0 : i32
    return %c0_i32, %c0_i32_0 : i32, i32
  }
  func.func @transform_7(%arg0: i32, %arg1: i32, %arg2: i32) -> (i32, i32, i32) {
    %c0_i32 = arith.constant 0 : i32
    return %arg0, %arg1, %arg2 : i32, i32, i32
  }
}

module attributes {stable_mosaic.version = 11 : i64} {
  func.func @_jpeg_core_kernel(%arg0: i32, %arg1: i32, %arg2: i32, %arg3: memref<1x16x16xf32, #tpu.memory_space<vmem>>, %arg4: memref<16x16xf32, #tpu.memory_space<vmem>>, %arg5: memref<16x16xf32, #tpu.memory_space<vmem>>, %arg6: memref<16x16xf32, #tpu.memory_space<vmem>>, %arg7: memref<16x16xf32, #tpu.memory_space<vmem>>, %arg8: memref<16x16xf32, #tpu.memory_space<vmem>>, %arg9: memref<16x16xf32, #tpu.memory_space<vmem>>, %arg10: memref<1x16x16xf32, #tpu.memory_space<vmem>>) attributes {dimension_semantics = [#tpu.dimension_semantics<parallel>, #tpu.dimension_semantics<parallel>, #tpu.dimension_semantics<parallel>], iteration_bounds = array<i64: 2, 1, 1>, scalar_prefetch = 0 : i64, scratch_operands = 0 : i64, tpu.core_type = #tpu.core_type<tc>, window_params = [{transform_indices = @transform_0, window_bounds = array<i64: 1, 16, 16>}, {pipeline_mode = #tpu.pipeline_mode<synchronous>, transform_indices = @transform_1, window_bounds = array<i64: 16, 16>}, {pipeline_mode = #tpu.pipeline_mode<synchronous>, transform_indices = @transform_2, window_bounds = array<i64: 16, 16>}, {pipeline_mode = #tpu.pipeline_mode<synchronous>, transform_indices = @transform_3, window_bounds = array<i64: 16, 16>}, {pipeline_mode = #tpu.pipeline_mode<synchronous>, transform_indices = @transform_4, window_bounds = array<i64: 16, 16>}, {pipeline_mode = #tpu.pipeline_mode<synchronous>, transform_indices = @transform_5, window_bounds = array<i64: 16, 16>}, {pipeline_mode = #tpu.pipeline_mode<synchronous>, transform_indices = @transform_6, window_bounds = array<i64: 16, 16>}, {transform_indices = @transform_7, window_bounds = array<i64: 1, 16, 16>}]} {
    %c0 = arith.constant 0 : index
    %c0_0 = arith.constant 0 : index
    %c0_1 = arith.constant 0 : index
    %0 = vector.load %arg3[%c0, %c0_0, %c0_1] : memref<1x16x16xf32, #tpu.memory_space<vmem>>, vector<1x16x16xf32>
    %1 = vector.shape_cast %0 : vector<1x16x16xf32> to vector<16x16xf32>
    %cst = arith.constant 1.280000e+02 : f32
    %2 = vector.broadcast %cst : f32 to vector<16x16xf32>
    %3 = arith.subf %1, %2 : vector<16x16xf32>
    %c0_2 = arith.constant 0 : index
    %c0_3 = arith.constant 0 : index
    %4 = vector.load %arg4[%c0_2, %c0_3] : memref<16x16xf32, #tpu.memory_space<vmem>>, vector<16x16xf32>
    %cst_4 = arith.constant dense<0.000000e+00> : vector<16x16xf32>
    %5 = tpu.matmul %4, %3, %cst_4 {dimension_numbers = #tpu.dot_dimension_numbers<[1], [0], [0], [1], [0, 0, 1, 1], [], []>} : vector<16x16xf32>, vector<16x16xf32>, vector<16x16xf32> -> vector<16x16xf32>
    %c0_5 = arith.constant 0 : index
    %c0_6 = arith.constant 0 : index
    %6 = vector.load %arg7[%c0_5, %c0_6] : memref<16x16xf32, #tpu.memory_space<vmem>>, vector<16x16xf32>
    %cst_7 = arith.constant dense<0.000000e+00> : vector<16x16xf32>
    %7 = tpu.matmul %5, %6, %cst_7 {dimension_numbers = #tpu.dot_dimension_numbers<[1], [0], [0], [1], [0, 0, 1, 1], [], []>} : vector<16x16xf32>, vector<16x16xf32>, vector<16x16xf32> -> vector<16x16xf32>
    %c0_8 = arith.constant 0 : index
    %c0_9 = arith.constant 0 : index
    %8 = vector.load %arg8[%c0_8, %c0_9] : memref<16x16xf32, #tpu.memory_space<vmem>>, vector<16x16xf32>
    %9 = arith.mulf %7, %8 : vector<16x16xf32>
    %10 = math.roundeven %9 : vector<16x16xf32>
    %11 = arith.subf %9, %10 : vector<16x16xf32>
    %12 = arith.mulf %11, %11 : vector<16x16xf32>
    %13 = arith.mulf %11, %12 : vector<16x16xf32>
    %14 = arith.addf %10, %13 : vector<16x16xf32>
    %c0_10 = arith.constant 0 : index
    %c0_11 = arith.constant 0 : index
    %15 = vector.load %arg9[%c0_10, %c0_11] : memref<16x16xf32, #tpu.memory_space<vmem>>, vector<16x16xf32>
    %16 = arith.mulf %14, %15 : vector<16x16xf32>
    %c0_12 = arith.constant 0 : index
    %c0_13 = arith.constant 0 : index
    %17 = vector.load %arg5[%c0_12, %c0_13] : memref<16x16xf32, #tpu.memory_space<vmem>>, vector<16x16xf32>
    %cst_14 = arith.constant dense<0.000000e+00> : vector<16x16xf32>
    %18 = tpu.matmul %17, %16, %cst_14 {dimension_numbers = #tpu.dot_dimension_numbers<[1], [0], [0], [1], [0, 0, 1, 1], [], []>} : vector<16x16xf32>, vector<16x16xf32>, vector<16x16xf32> -> vector<16x16xf32>
    %c0_15 = arith.constant 0 : index
    %c0_16 = arith.constant 0 : index
    %19 = vector.load %arg6[%c0_15, %c0_16] : memref<16x16xf32, #tpu.memory_space<vmem>>, vector<16x16xf32>
    %cst_17 = arith.constant dense<0.000000e+00> : vector<16x16xf32>
    %20 = tpu.matmul %18, %19, %cst_17 {dimension_numbers = #tpu.dot_dimension_numbers<[1], [0], [0], [1], [0, 0, 1, 1], [], []>} : vector<16x16xf32>, vector<16x16xf32>, vector<16x16xf32> -> vector<16x16xf32>
    %cst_18 = arith.constant 1.280000e+02 : f32
    %21 = vector.broadcast %cst_18 : f32 to vector<16x16xf32>
    %22 = arith.addf %20, %21 : vector<16x16xf32>
    %c0_19 = arith.constant 0 : index
    %c0_20 = arith.constant 0 : index
    %c0_21 = arith.constant 0 : index
    %23 = vector.load %arg10[%c0_19, %c0_20, %c0_21] : memref<1x16x16xf32, #tpu.memory_space<vmem>>, vector<1x16x16xf32>
    %24 = vector.shape_cast %23 : vector<1x16x16xf32> to vector<16x16xf32>
    %25 = vector.shape_cast %22 : vector<16x16xf32> to vector<1x16x16xf32>
    tpu.vector_store %arg10[%c0_19, %c0_20, %c0_21], %25 {strides = array<i32>} : memref<1x16x16xf32, #tpu.memory_space<vmem>>, vector<1x16x16xf32>,
    return
  }
  func.func @transform_0(%arg0: i32, %arg1: i32, %arg2: i32) -> (i32, i32, i32) {
    %c0_i32 = arith.constant 0 : i32
    return %arg0, %arg1, %arg2 : i32, i32, i32
  }
  func.func @transform_1(%arg0: i32, %arg1: i32, %arg2: i32) -> (i32, i32) {
    %c0_i32 = arith.constant 0 : i32
    %c0_i32_0 = arith.constant 0 : i32
    %c0_i32_1 = arith.constant 0 : i32
    return %c0_i32, %c0_i32_0 : i32, i32
  }
  func.func @transform_2(%arg0: i32, %arg1: i32, %arg2: i32) -> (i32, i32) {
    %c0_i32 = arith.constant 0 : i32
    %c0_i32_0 = arith.constant 0 : i32
    %c0_i32_1 = arith.constant 0 : i32
    return %c0_i32, %c0_i32_0 : i32, i32
  }
  func.func @transform_3(%arg0: i32, %arg1: i32, %arg2: i32) -> (i32, i32) {
    %c0_i32 = arith.constant 0 : i32
    %c0_i32_0 = arith.constant 0 : i32
    %c0_i32_1 = arith.constant 0 : i32
    return %c0_i32, %c0_i32_0 : i32, i32
  }
  func.func @transform_4(%arg0: i32, %arg1: i32, %arg2: i32) -> (i32, i32) {
    %c0_i32 = arith.constant 0 : i32
    %c0_i32_0 = arith.constant 0 : i32
    %c0_i32_1 = arith.constant 0 : i32
    return %c0_i32, %c0_i32_0 : i32, i32
  }
  func.func @transform_5(%arg0: i32, %arg1: i32, %arg2: i32) -> (i32, i32) {
    %c0_i32 = arith.constant 0 : i32
    %c0_i32_0 = arith.constant 0 : i32
    %c0_i32_1 = arith.constant 0 : i32
    return %c0_i32, %c0_i32_0 : i32, i32
  }
  func.func @transform_6(%arg0: i32, %arg1: i32, %arg2: i32) -> (i32, i32) {
    %c0_i32 = arith.constant 0 : i32
    %c0_i32_0 = arith.constant 0 : i32
    %c0_i32_1 = arith.constant 0 : i32
    return %c0_i32, %c0_i32_0 : i32, i32
  }
  func.func @transform_7(%arg0: i32, %arg1: i32, %arg2: i32) -> (i32, i32, i32) {
    %c0_i32 = arith.constant 0 : i32
    return %arg0, %arg1, %arg2 : i32, i32, i32
  }
}

module attributes {stable_mosaic.version = 11 : i64} {
  func.func @_rgb2ycbcr_ds_kernel(%arg0: i32, %arg1: i32, %arg2: i32, %arg3: memref<1x3x16x16xf32, #tpu.memory_space<vmem>>, %arg4: memref<8x16xf32, #tpu.memory_space<vmem>>, %arg5: memref<16x8xf32, #tpu.memory_space<vmem>>, %arg6: memref<1x16x16xf32, #tpu.memory_space<vmem>>, %arg7: memref<1x8x8xf32, #tpu.memory_space<vmem>>, %arg8: memref<1x8x8xf32, #tpu.memory_space<vmem>>) attributes {dimension_semantics = [#tpu.dimension_semantics<parallel>, #tpu.dimension_semantics<parallel>, #tpu.dimension_semantics<parallel>], iteration_bounds = array<i64: 2, 1, 1>, scalar_prefetch = 0 : i64, scratch_operands = 0 : i64, tpu.core_type = #tpu.core_type<tc>, window_params = [{transform_indices = @transform_0, window_bounds = array<i64: 1, 3, 16, 16>}, {pipeline_mode = #tpu.pipeline_mode<synchronous>, transform_indices = @transform_1, window_bounds = array<i64: 8, 16>}, {pipeline_mode = #tpu.pipeline_mode<synchronous>, transform_indices = @transform_2, window_bounds = array<i64: 16, 8>}, {transform_indices = @transform_3, window_bounds = array<i64: 1, 16, 16>}, {transform_indices = @transform_4, window_bounds = array<i64: 1, 8, 8>}, {transform_indices = @transform_5, window_bounds = array<i64: 1, 8, 8>}]} {
    %c0 = arith.constant 0 : index
    %c0_0 = arith.constant 0 : index
    %c0_1 = arith.constant 0 : index
    %c0_2 = arith.constant 0 : index
    %0 = vector.load %arg3[%c0, %c0_0, %c0_1, %c0_2] : memref<1x3x16x16xf32, #tpu.memory_space<vmem>>, vector<1x1x16x16xf32>
    %1 = vector.shape_cast %0 : vector<1x1x16x16xf32> to vector<16x16xf32>
    %cst = arith.constant 2.550000e+02 : f32
    %2 = vector.broadcast %cst : f32 to vector<16x16xf32>
    %3 = arith.mulf %1, %2 : vector<16x16xf32>
    %c0_3 = arith.constant 0 : index
    %c1 = arith.constant 1 : index
    %c0_4 = arith.constant 0 : index
    %c0_5 = arith.constant 0 : index
    %4 = vector.load %arg3[%c0_3, %c1, %c0_4, %c0_5] : memref<1x3x16x16xf32, #tpu.memory_space<vmem>>, vector<1x1x16x16xf32>
    %5 = vector.shape_cast %4 : vector<1x1x16x16xf32> to vector<16x16xf32>
    %cst_6 = arith.constant 2.550000e+02 : f32
    %6 = vector.broadcast %cst_6 : f32 to vector<16x16xf32>
    %7 = arith.mulf %5, %6 : vector<16x16xf32>
    %c0_7 = arith.constant 0 : index
    %c2 = arith.constant 2 : index
    %c0_8 = arith.constant 0 : index
    %c0_9 = arith.constant 0 : index
    %8 = vector.load %arg3[%c0_7, %c2, %c0_8, %c0_9] : memref<1x3x16x16xf32, #tpu.memory_space<vmem>>, vector<1x1x16x16xf32>
    %9 = vector.shape_cast %8 : vector<1x1x16x16xf32> to vector<16x16xf32>
    %cst_10 = arith.constant 2.550000e+02 : f32
    %10 = vector.broadcast %cst_10 : f32 to vector<16x16xf32>
    %11 = arith.mulf %9, %10 : vector<16x16xf32>
    %cst_11 = arith.constant 2.990000e-01 : f32
    %12 = vector.broadcast %cst_11 : f32 to vector<16x16xf32>
    %13 = arith.mulf %12, %3 : vector<16x16xf32>
    %cst_12 = arith.constant 5.870000e-01 : f32
    %14 = vector.broadcast %cst_12 : f32 to vector<16x16xf32>
    %15 = arith.mulf %14, %7 : vector<16x16xf32>
    %16 = arith.addf %13, %15 : vector<16x16xf32>
    %cst_13 = arith.constant 1.140000e-01 : f32
    %17 = vector.broadcast %cst_13 : f32 to vector<16x16xf32>
    %18 = arith.mulf %17, %11 : vector<16x16xf32>
    %19 = arith.addf %16, %18 : vector<16x16xf32>
    %c0_14 = arith.constant 0 : index
    %c0_15 = arith.constant 0 : index
    %c0_16 = arith.constant 0 : index
    %20 = vector.load %arg6[%c0_14, %c0_15, %c0_16] : memref<1x16x16xf32, #tpu.memory_space<vmem>>, vector<1x16x16xf32>
    %21 = vector.shape_cast %20 : vector<1x16x16xf32> to vector<16x16xf32>
    %22 = vector.shape_cast %19 : vector<16x16xf32> to vector<1x16x16xf32>
    tpu.vector_store %arg6[%c0_14, %c0_15, %c0_16], %22 {strides = array<i32>} : memref<1x16x16xf32, #tpu.memory_space<vmem>>, vector<1x16x16xf32>,
    %cst_17 = arith.constant -1.687360e-01 : f32
    %23 = vector.broadcast %cst_17 : f32 to vector<16x16xf32>
    %24 = arith.mulf %23, %3 : vector<16x16xf32>
    %cst_18 = arith.constant 3.312640e-01 : f32
    %25 = vector.broadcast %cst_18 : f32 to vector<16x16xf32>
    %26 = arith.mulf %25, %7 : vector<16x16xf32>
    %27 = arith.subf %24, %26 : vector<16x16xf32>
    %cst_19 = arith.constant 5.000000e-01 : f32
    %28 = vector.broadcast %cst_19 : f32 to vector<16x16xf32>
    %29 = arith.mulf %28, %11 : vector<16x16xf32>
    %30 = arith.addf %27, %29 : vector<16x16xf32>
    %cst_20 = arith.constant 1.280000e+02 : f32
    %31 = vector.broadcast %cst_20 : f32 to vector<16x16xf32>
    %32 = arith.addf %30, %31 : vector<16x16xf32>
    %cst_21 = arith.constant 5.000000e-01 : f32
    %33 = vector.broadcast %cst_21 : f32 to vector<16x16xf32>
    %34 = arith.mulf %33, %3 : vector<16x16xf32>
    %cst_22 = arith.constant 4.186880e-01 : f32
    %35 = vector.broadcast %cst_22 : f32 to vector<16x16xf32>
    %36 = arith.mulf %35, %7 : vector<16x16xf32>
    %37 = arith.subf %34, %36 : vector<16x16xf32>
    %cst_23 = arith.constant 8.131200e-02 : f32
    %38 = vector.broadcast %cst_23 : f32 to vector<16x16xf32>
    %39 = arith.mulf %38, %11 : vector<16x16xf32>
    %40 = arith.subf %37, %39 : vector<16x16xf32>
    %cst_24 = arith.constant 1.280000e+02 : f32
    %41 = vector.broadcast %cst_24 : f32 to vector<16x16xf32>
    %42 = arith.addf %40, %41 : vector<16x16xf32>
    %c0_25 = arith.constant 0 : index
    %c0_26 = arith.constant 0 : index
    %43 = vector.load %arg4[%c0_25, %c0_26] : memref<8x16xf32, #tpu.memory_space<vmem>>, vector<8x16xf32>
    %c0_27 = arith.constant 0 : index
    %c0_28 = arith.constant 0 : index
    %44 = vector.load %arg5[%c0_27, %c0_28] : memref<16x8xf32, #tpu.memory_space<vmem>>, vector<16x8xf32>
    %cst_29 = arith.constant dense<0.000000e+00> : vector<8x16xf32>
    %45 = tpu.matmul %43, %32, %cst_29 {dimension_numbers = #tpu.dot_dimension_numbers<[1], [0], [0], [1], [0, 0, 1, 1], [], []>} : vector<8x16xf32>, vector<16x16xf32>, vector<8x16xf32> -> vector<8x16xf32>
    %cst_30 = arith.constant dense<0.000000e+00> : vector<8x8xf32>
    %46 = tpu.matmul %45, %44, %cst_30 {dimension_numbers = #tpu.dot_dimension_numbers<[1], [0], [0], [1], [0, 0, 1, 1], [], []>} : vector<8x16xf32>, vector<16x8xf32>, vector<8x8xf32> -> vector<8x8xf32>
    %c0_31 = arith.constant 0 : index
    %c0_32 = arith.constant 0 : index
    %c0_33 = arith.constant 0 : index
    %47 = vector.load %arg7[%c0_31, %c0_32, %c0_33] : memref<1x8x8xf32, #tpu.memory_space<vmem>>, vector<1x8x8xf32>
    %48 = vector.shape_cast %47 : vector<1x8x8xf32> to vector<8x8xf32>
    %49 = vector.shape_cast %46 : vector<8x8xf32> to vector<1x8x8xf32>
    tpu.vector_store %arg7[%c0_31, %c0_32, %c0_33], %49 {strides = array<i32>} : memref<1x8x8xf32, #tpu.memory_space<vmem>>, vector<1x8x8xf32>,
    %cst_34 = arith.constant dense<0.000000e+00> : vector<8x16xf32>
    %50 = tpu.matmul %43, %42, %cst_34 {dimension_numbers = #tpu.dot_dimension_numbers<[1], [0], [0], [1], [0, 0, 1, 1], [], []>} : vector<8x16xf32>, vector<16x16xf32>, vector<8x16xf32> -> vector<8x16xf32>
    %cst_35 = arith.constant dense<0.000000e+00> : vector<8x8xf32>
    %51 = tpu.matmul %50, %44, %cst_35 {dimension_numbers = #tpu.dot_dimension_numbers<[1], [0], [0], [1], [0, 0, 1, 1], [], []>} : vector<8x16xf32>, vector<16x8xf32>, vector<8x8xf32> -> vector<8x8xf32>
    %c0_36 = arith.constant 0 : index
    %c0_37 = arith.constant 0 : index
    %c0_38 = arith.constant 0 : index
    %52 = vector.load %arg8[%c0_36, %c0_37, %c0_38] : memref<1x8x8xf32, #tpu.memory_space<vmem>>, vector<1x8x8xf32>
    %53 = vector.shape_cast %52 : vector<1x8x8xf32> to vector<8x8xf32>
    %54 = vector.shape_cast %51 : vector<8x8xf32> to vector<1x8x8xf32>
    tpu.vector_store %arg8[%c0_36, %c0_37, %c0_38], %54 {strides = array<i32>} : memref<1x8x8xf32, #tpu.memory_space<vmem>>, vector<1x8x8xf32>,
    return
  }
  func.func @transform_0(%arg0: i32, %arg1: i32, %arg2: i32) -> (i32, i32, i32, i32) {
    %c0_i32 = arith.constant 0 : i32
    %c0_i32_0 = arith.constant 0 : i32
    return %arg0, %c0_i32, %arg1, %arg2 : i32, i32, i32, i32
  }
  func.func @transform_1(%arg0: i32, %arg1: i32, %arg2: i32) -> (i32, i32) {
    %c0_i32 = arith.constant 0 : i32
    %c0_i32_0 = arith.constant 0 : i32
    %c0_i32_1 = arith.constant 0 : i32
    return %c0_i32, %c0_i32_0 : i32, i32
  }
  func.func @transform_2(%arg0: i32, %arg1: i32, %arg2: i32) -> (i32, i32) {
    %c0_i32 = arith.constant 0 : i32
    %c0_i32_0 = arith.constant 0 : i32
    %c0_i32_1 = arith.constant 0 : i32
    return %c0_i32, %c0_i32_0 : i32, i32
  }
  func.func @transform_3(%arg0: i32, %arg1: i32, %arg2: i32) -> (i32, i32, i32) {
    %c0_i32 = arith.constant 0 : i32
    return %arg0, %arg1, %arg2 : i32, i32, i32
  }
  func.func @transform_4(%arg0: i32, %arg1: i32, %arg2: i32) -> (i32, i32, i32) {
    %c0_i32 = arith.constant 0 : i32
    return %arg0, %arg1, %arg2 : i32, i32, i32
  }
  func.func @transform_5(%arg0: i32, %arg1: i32, %arg2: i32) -> (i32, i32, i32) {
    %c0_i32 = arith.constant 0 : i32
    return %arg0, %arg1, %arg2 : i32, i32, i32
  }
}

module attributes {stable_mosaic.version = 11 : i64} {
  func.func @_ycbcr2rgb_us_kernel(%arg0: i32, %arg1: i32, %arg2: i32, %arg3: memref<1x16x16xf32, #tpu.memory_space<vmem>>, %arg4: memref<1x8x8xf32, #tpu.memory_space<vmem>>, %arg5: memref<1x8x8xf32, #tpu.memory_space<vmem>>, %arg6: memref<16x8xf32, #tpu.memory_space<vmem>>, %arg7: memref<8x16xf32, #tpu.memory_space<vmem>>, %arg8: memref<1x3x16x16xf32, #tpu.memory_space<vmem>>) attributes {dimension_semantics = [#tpu.dimension_semantics<parallel>, #tpu.dimension_semantics<parallel>, #tpu.dimension_semantics<parallel>], iteration_bounds = array<i64: 2, 1, 1>, scalar_prefetch = 0 : i64, scratch_operands = 0 : i64, tpu.core_type = #tpu.core_type<tc>, window_params = [{transform_indices = @transform_0, window_bounds = array<i64: 1, 16, 16>}, {transform_indices = @transform_1, window_bounds = array<i64: 1, 8, 8>}, {transform_indices = @transform_2, window_bounds = array<i64: 1, 8, 8>}, {pipeline_mode = #tpu.pipeline_mode<synchronous>, transform_indices = @transform_3, window_bounds = array<i64: 16, 8>}, {pipeline_mode = #tpu.pipeline_mode<synchronous>, transform_indices = @transform_4, window_bounds = array<i64: 8, 16>}, {transform_indices = @transform_5, window_bounds = array<i64: 1, 3, 16, 16>}]} {
    %c0 = arith.constant 0 : index
    %c0_0 = arith.constant 0 : index
    %c0_1 = arith.constant 0 : index
    %0 = vector.load %arg3[%c0, %c0_0, %c0_1] : memref<1x16x16xf32, #tpu.memory_space<vmem>>, vector<1x16x16xf32>
    %1 = vector.shape_cast %0 : vector<1x16x16xf32> to vector<16x16xf32>
    %c0_2 = arith.constant 0 : index
    %c0_3 = arith.constant 0 : index
    %2 = vector.load %arg6[%c0_2, %c0_3] : memref<16x8xf32, #tpu.memory_space<vmem>>, vector<16x8xf32>
    %c0_4 = arith.constant 0 : index
    %c0_5 = arith.constant 0 : index
    %3 = vector.load %arg7[%c0_4, %c0_5] : memref<8x16xf32, #tpu.memory_space<vmem>>, vector<8x16xf32>
    %c0_6 = arith.constant 0 : index
    %c0_7 = arith.constant 0 : index
    %c0_8 = arith.constant 0 : index
    %4 = vector.load %arg4[%c0_6, %c0_7, %c0_8] : memref<1x8x8xf32, #tpu.memory_space<vmem>>, vector<1x8x8xf32>
    %5 = vector.shape_cast %4 : vector<1x8x8xf32> to vector<8x8xf32>
    %cst = arith.constant dense<0.000000e+00> : vector<16x8xf32>
    %6 = tpu.matmul %2, %5, %cst {dimension_numbers = #tpu.dot_dimension_numbers<[1], [0], [0], [1], [0, 0, 1, 1], [], []>} : vector<16x8xf32>, vector<8x8xf32>, vector<16x8xf32> -> vector<16x8xf32>
    %cst_9 = arith.constant dense<0.000000e+00> : vector<16x16xf32>
    %7 = tpu.matmul %6, %3, %cst_9 {dimension_numbers = #tpu.dot_dimension_numbers<[1], [0], [0], [1], [0, 0, 1, 1], [], []>} : vector<16x8xf32>, vector<8x16xf32>, vector<16x16xf32> -> vector<16x16xf32>
    %cst_10 = arith.constant 1.280000e+02 : f32
    %8 = vector.broadcast %cst_10 : f32 to vector<16x16xf32>
    %9 = arith.subf %7, %8 : vector<16x16xf32>
    %c0_11 = arith.constant 0 : index
    %c0_12 = arith.constant 0 : index
    %c0_13 = arith.constant 0 : index
    %10 = vector.load %arg5[%c0_11, %c0_12, %c0_13] : memref<1x8x8xf32, #tpu.memory_space<vmem>>, vector<1x8x8xf32>
    %11 = vector.shape_cast %10 : vector<1x8x8xf32> to vector<8x8xf32>
    %cst_14 = arith.constant dense<0.000000e+00> : vector<16x8xf32>
    %12 = tpu.matmul %2, %11, %cst_14 {dimension_numbers = #tpu.dot_dimension_numbers<[1], [0], [0], [1], [0, 0, 1, 1], [], []>} : vector<16x8xf32>, vector<8x8xf32>, vector<16x8xf32> -> vector<16x8xf32>
    %cst_15 = arith.constant dense<0.000000e+00> : vector<16x16xf32>
    %13 = tpu.matmul %12, %3, %cst_15 {dimension_numbers = #tpu.dot_dimension_numbers<[1], [0], [0], [1], [0, 0, 1, 1], [], []>} : vector<16x8xf32>, vector<8x16xf32>, vector<16x16xf32> -> vector<16x16xf32>
    %cst_16 = arith.constant 1.280000e+02 : f32
    %14 = vector.broadcast %cst_16 : f32 to vector<16x16xf32>
    %15 = arith.subf %13, %14 : vector<16x16xf32>
    %cst_17 = arith.constant 1.402000e+00 : f32
    %16 = vector.broadcast %cst_17 : f32 to vector<16x16xf32>
    %17 = arith.mulf %16, %15 : vector<16x16xf32>
    %18 = arith.addf %1, %17 : vector<16x16xf32>
    %cst_18 = arith.constant 3.441360e-01 : f32
    %19 = vector.broadcast %cst_18 : f32 to vector<16x16xf32>
    %20 = arith.mulf %19, %9 : vector<16x16xf32>
    %21 = arith.subf %1, %20 : vector<16x16xf32>
    %cst_19 = arith.constant 7.141360e-01 : f32
    %22 = vector.broadcast %cst_19 : f32 to vector<16x16xf32>
    %23 = arith.mulf %22, %15 : vector<16x16xf32>
    %24 = arith.subf %21, %23 : vector<16x16xf32>
    %cst_20 = arith.constant 1.772000e+00 : f32
    %25 = vector.broadcast %cst_20 : f32 to vector<16x16xf32>
    %26 = arith.mulf %25, %9 : vector<16x16xf32>
    %27 = arith.addf %1, %26 : vector<16x16xf32>
    %cst_21 = arith.constant 0.000000e+00 : f32
    %28 = vector.broadcast %cst_21 : f32 to vector<16x16xf32>
    %29 = arith.maximumf %28, %18 : vector<16x16xf32>
    %cst_22 = arith.constant 2.550000e+02 : f32
    %30 = vector.broadcast %cst_22 : f32 to vector<16x16xf32>
    %31 = arith.minimumf %30, %29 : vector<16x16xf32>
    %cst_23 = arith.constant 0.00392156886 : f32
    %32 = vector.broadcast %cst_23 : f32 to vector<16x16xf32>
    %33 = arith.mulf %31, %32 : vector<16x16xf32>
    %c0_24 = arith.constant 0 : index
    %c0_25 = arith.constant 0 : index
    %c0_26 = arith.constant 0 : index
    %c0_27 = arith.constant 0 : index
    %34 = vector.load %arg8[%c0_24, %c0_25, %c0_26, %c0_27] : memref<1x3x16x16xf32, #tpu.memory_space<vmem>>, vector<1x1x16x16xf32>
    %35 = vector.shape_cast %34 : vector<1x1x16x16xf32> to vector<16x16xf32>
    %36 = vector.shape_cast %33 : vector<16x16xf32> to vector<1x1x16x16xf32>
    tpu.vector_store %arg8[%c0_24, %c0_25, %c0_26, %c0_27], %36 {strides = array<i32>} : memref<1x3x16x16xf32, #tpu.memory_space<vmem>>, vector<1x1x16x16xf32>,
    %cst_28 = arith.constant 0.000000e+00 : f32
    %37 = vector.broadcast %cst_28 : f32 to vector<16x16xf32>
    %38 = arith.maximumf %37, %24 : vector<16x16xf32>
    %cst_29 = arith.constant 2.550000e+02 : f32
    %39 = vector.broadcast %cst_29 : f32 to vector<16x16xf32>
    %40 = arith.minimumf %39, %38 : vector<16x16xf32>
    %cst_30 = arith.constant 0.00392156886 : f32
    %41 = vector.broadcast %cst_30 : f32 to vector<16x16xf32>
    %42 = arith.mulf %40, %41 : vector<16x16xf32>
    %c0_31 = arith.constant 0 : index
    %c1 = arith.constant 1 : index
    %c0_32 = arith.constant 0 : index
    %c0_33 = arith.constant 0 : index
    %43 = vector.load %arg8[%c0_31, %c1, %c0_32, %c0_33] : memref<1x3x16x16xf32, #tpu.memory_space<vmem>>, vector<1x1x16x16xf32>
    %44 = vector.shape_cast %43 : vector<1x1x16x16xf32> to vector<16x16xf32>
    %45 = vector.shape_cast %42 : vector<16x16xf32> to vector<1x1x16x16xf32>
    tpu.vector_store %arg8[%c0_31, %c1, %c0_32, %c0_33], %45 {strides = array<i32>} : memref<1x3x16x16xf32, #tpu.memory_space<vmem>>, vector<1x1x16x16xf32>,
    %cst_34 = arith.constant 0.000000e+00 : f32
    %46 = vector.broadcast %cst_34 : f32 to vector<16x16xf32>
    %47 = arith.maximumf %46, %27 : vector<16x16xf32>
    %cst_35 = arith.constant 2.550000e+02 : f32
    %48 = vector.broadcast %cst_35 : f32 to vector<16x16xf32>
    %49 = arith.minimumf %48, %47 : vector<16x16xf32>
    %cst_36 = arith.constant 0.00392156886 : f32
    %50 = vector.broadcast %cst_36 : f32 to vector<16x16xf32>
    %51 = arith.mulf %49, %50 : vector<16x16xf32>
    %c0_37 = arith.constant 0 : index
    %c2 = arith.constant 2 : index
    %c0_38 = arith.constant 0 : index
    %c0_39 = arith.constant 0 : index
    %52 = vector.load %arg8[%c0_37, %c2, %c0_38, %c0_39] : memref<1x3x16x16xf32, #tpu.memory_space<vmem>>, vector<1x1x16x16xf32>
    %53 = vector.shape_cast %52 : vector<1x1x16x16xf32> to vector<16x16xf32>
    %54 = vector.shape_cast %51 : vector<16x16xf32> to vector<1x1x16x16xf32>
    tpu.vector_store %arg8[%c0_37, %c2, %c0_38, %c0_39], %54 {strides = array<i32>} : memref<1x3x16x16xf32, #tpu.memory_space<vmem>>, vector<1x1x16x16xf32>,
    return
  }
  func.func @transform_0(%arg0: i32, %arg1: i32, %arg2: i32) -> (i32, i32, i32) {
    %c0_i32 = arith.constant 0 : i32
    return %arg0, %arg1, %arg2 : i32, i32, i32
  }
  func.func @transform_1(%arg0: i32, %arg1: i32, %arg2: i32) -> (i32, i32, i32) {
    %c0_i32 = arith.constant 0 : i32
    return %arg0, %arg1, %arg2 : i32, i32, i32
  }
  func.func @transform_2(%arg0: i32, %arg1: i32, %arg2: i32) -> (i32, i32, i32) {
    %c0_i32 = arith.constant 0 : i32
    return %arg0, %arg1, %arg2 : i32, i32, i32
  }
  func.func @transform_3(%arg0: i32, %arg1: i32, %arg2: i32) -> (i32, i32) {
    %c0_i32 = arith.constant 0 : i32
    %c0_i32_0 = arith.constant 0 : i32
    %c0_i32_1 = arith.constant 0 : i32
    return %c0_i32, %c0_i32_0 : i32, i32
  }
  func.func @transform_4(%arg0: i32, %arg1: i32, %arg2: i32) -> (i32, i32) {
    %c0_i32 = arith.constant 0 : i32
    %c0_i32_0 = arith.constant 0 : i32
    %c0_i32_1 = arith.constant 0 : i32
    return %c0_i32, %c0_i32_0 : i32, i32
  }
  func.func @transform_5(%arg0: i32, %arg1: i32, %arg2: i32) -> (i32, i32, i32, i32) {
    %c0_i32 = arith.constant 0 : i32
    %c0_i32_0 = arith.constant 0 : i32
    return %arg0, %c0_i32, %arg1, %arg2 : i32, i32, i32, i32
  }
}

</mosaic_0001>

<bundles_post_ra>
// kernel: diff_jpeg.7
= control target key start
LH: loop header
LB: loop body
LE: loop exit
PB: predicated region body
PF: predicated region fallthrough
CT: control target
= control target key end

     0   :  { %s865_s24 = smov 0   ;;  %s867_s25 = smov 0   ;;  %s932_s0 = inlined_call_operand.vmem [shape: f32[2,8,8], index: 0, kind: input, shape index: {}]   ;;  %s933_s1 = inlined_call_operand.vmem [shape: f32[8,8], index: 1, kind: input, shape index: {}, may-alias: {1,3}]   ;;  %s934_s2 = inlined_call_operand.vmem [shape: f32[8,8], index: 2, kind: input, shape index: {}, may-alias: {2,4}]   ;;  %s935_s3 = inlined_call_operand.vmem [shape: f32[8,8], index: 3, kind: input, shape index: {}, may-alias: {1,3}]   ;;  %s936_s4 = inlined_call_operand.vmem [shape: f32[8,8], index: 4, kind: input, shape index: {}, may-alias: {2,4}]   ;;  %s937_s5 = inlined_call_operand.vmem [shape: f32[8,8], index: 5, kind: input, shape index: {}]   ;;  %s938_s6 = inlined_call_operand.vmem [shape: f32[8,8], index: 6, kind: input, shape index: {}]   ;;  %s939_s7 = inlined_call_operand.vmem [shape: f32[2,8,8], index: 7, kind: output, shape index: {}]  }
   0x1   :  { %s869_s26 = smov 0  }
   0x2 LB: > { %s36_s27 = sadd.s32 1, %s817_s25  ;;  %p734_p0 = scmp.ge.s32.totalorder %s821_s26, 1  ;;  %s821_s26 = sphi %s869_s26, %s17_s26   ;;  %s817_s25 = sphi %s867_s25, %s941_s25   ;;  %s813_s24 = sphi %s865_s24, %s940_s24  }
   0x3   : > { %p38_p1 = scmp.ge.s32.totalorder %s36_s27, 2  ;;  %p269_p2 = scmp.lt.s32.totalorder %s821_s26, 3 }
   0x5   : > { %s943_s27 = smov (%p38_p1, %s36_s27), 0  ;;  %p270_p3 = pnand %p734_p0, %p269_p2 }
   0x6   : > { %p311_p4 = scmp.lt.s32.totalorder (!%p270_p3), %s813_s24, 1  ;;  %v823_v0 = vmov (!%p270_p3), 0.0   ;;  %vm824_vm0 = vmmov (!%p270_p3), 0   ;;  %v333_v3 = vld [vmem:[%s933_s1] sm:$0xff] (!%p270_p3)  ;;  %vm334_vm1 = vcmask (!%p270_p3), 64512  }
   0x7   : > { %273 = sbr.rel (%p270_p3) target bundleno = 887 (0x377), region = 48  ;;  %752 = vmatprep.subr.mxu0 (!%p270_p3), %v823_v0  ;;  %754 = vmatprep.mubr.msk.f32.mxu0 (!%p270_p3), %vm824_vm0, %v823_v0  ;;  %v408_v4 = vld [vmem:[%s936_s4] sm:$0xff] (!%p270_p3) }
   0x8   : > { %757 = vmatprep.subr.mxu1 (!%p270_p3), %v823_v0  ;;  %759 = vmatprep.mubr.msk.f32.mxu1 (!%p270_p3), %vm824_vm0, %v823_v0  ;;  %v565_v7 = vld [vmem:[%s935_s3] sm:$0xff] (!%p270_p3) }
   0x9   : > { %758 = vmatpush3.msra.mxu1 (!%p270_p3), %v408_v4  ;;  %v482_v8 = vld [vmem:[%s937_s5] sm:$0xff] (!%p270_p3) }
   0xa   : > { %767 = vmatprep.subr.mxu1 (!%p270_p3), %v823_v0  ;;  %v489_v16 = vld [vmem:[%s938_s6] sm:$0xff] (!%p270_p3) }
   0xb   : > { %v491_v19 = vld [vmem:[%s934_s2] sm:$0xff] (!%p270_p3) }
   0xe   : > { %s945_s24 = smov (!%p311_p4, %s813_s24), 1 }
   0xf   : > { %s735_s28 = sshll.u32 %s945_s24, 3 }
  0x10   : > { %s320_s8 = scalar_lea.vmem %s932_s0, %s735_s28  ;;  %s330_s23 = scalar_lea.vmem %s939_s7, %s735_s28 }
  0x11   : > { %v331_v1 = vld [vmem:[%s320_s8] sm:$0xff] }
  0x12   : > { %v737_v2 = vadd.f32 -128.0, %v331_v1 }
  0x14   : > { %753 = vmatpush3.msra.mxu0 %v737_v2 }
  0x15   : > { %755 = vmatmul.mubr.msk.f32.vlgmr.msra.gmra.mrb[0].mxu0 %vm334_vm1, %v333_v3  ;;  %762 = vmatprep.subr.mxu0 %v823_v0 }
  0x16   : > { %764 = vmatprep.mubr.msk.f32.mxu0 %vm824_vm0, %v823_v0 }
  0xe8   : > { %v404_v5 = vpop.f32.mrb[0].mxu0 }
  0xe9   : > { %v756_v6 = vpop.f32.mrb[1].mxu0  ;;  %760 = vmatmul.mubr.msk.f32.vlgmr.msra.gmra.mrb[0].mxu1 %vm334_vm1, %v404_v5 }
  0xea   : > { %769 = vmatprep.mubr.msk.f32.mxu1 %vm824_vm0, %v823_v0  ;;  %768 = vmatpush3.msra.mxu1 %v565_v7 }
 0x1bc   : > { %v478_v9 = vpop.f32.mrb[0].mxu1 }
 0x1bd   : > { %v483_v10 = vmul.f32 %v482_v8, %v478_v9  ;;  %v761_v11 = vpop.f32.mrb[1].mxu1 }
 0x1bf   : > { %v772_v12 = vround.rtne.f32 %v483_v10 }
 0x1c1   : > { %v485_v13 = vsub.f32 %v483_v10, %v772_v12 }
 0x1c3   : > { %v486_v14 = vmul.f32 %v485_v13, %v485_v13 }
 0x1c5   : > { %v487_v15 = vmul.f32 %v486_v14, %v485_v13 }
 0x1c7   : > { %v488_v17 = vadd.f32 %v772_v12, %v487_v15 }
 0x1c9   : > { %v490_v18 = vmul.f32 %v489_v16, %v488_v17 }
 0x1cb   : > { %763 = vmatpush3.msra.mxu0 %v490_v18 }
 0x1cc   : > { %765 = vmatmul.mubr.msk.f32.vlgmr.msra.gmra.mrb[2].mxu0 %vm334_vm1, %v491_v19 }
 0x29f   : > { %v561_v20 = vpop.f32.mrb[2].mxu0 }
 0x2a0   : > { %v766_v21 = vpop.f32.mrb[3].mxu0  ;;  %770 = vmatmul.mubr.msk.f32.vlgmr.msra.gmra.mrb[2].mxu1 %vm334_vm1, %v561_v20 }
 0x373   : > { %v635_v22 = vpop.f32.mrb[2].mxu1 }
 0x374   : > { %v636_v23 = vadd.f32 128.0, %v635_v22  ;;  %v771_v24 = vpop.f32.mrb[3].mxu1 }
 0x376   : > { %639 = vst.msk [vmem:[%s330_s23] sm:$0xff] %vm334_vm1, %v636_v23 }
 0x377 PF: > { %s17_s26 = sadd.s32 1, %s821_s26   ;;  %s940_s24 = smov %s817_s25 }
 0x378   : > { %p14_p5 = scmp.ge.s32.totalorder %s17_s26, 4   ;;  %s941_s25 = smov %s943_s27 }
 0x37a   :  { %16 = sbr.rel (!%p14_p5) target bundleno = 2 (0x2), region = 78 }

// kernel: diff_jpeg.9
= control target key start
LH: loop header
LB: loop body
LE: loop exit
PB: predicated region body
PF: predicated region fallthrough
CT: control target
= control target key end

     0   :  { %10 = vsyncpa [#allocation3], 0  ;;  %s1249_s0 = inlined_call_operand.vmem [shape: f32[2,16,16], index: 0, kind: input, shape index: {}]   ;;  %s1250_s1 = inlined_call_operand.vmem [shape: f32[2,8,8], index: 1, kind: input, shape index: {}]   ;;  %s1251_s2 = inlined_call_operand.vmem [shape: f32[2,8,8], index: 2, kind: input, shape index: {}]   ;;  %s1252_s3 = inlined_call_operand.vmem [shape: f32[16,8], index: 3, kind: input, shape index: {}]   ;;  %s1253_s4 = inlined_call_operand.vmem [shape: f32[8,16], index: 4, kind: input, shape index: {}]   ;;  %s1254_s5 = inlined_call_operand.hbm [shape: f32[2,3,16,16], index: 5, kind: output, shape index: {}]  }
   0x1   :  { %12 = vsyncpa [#allocation3 + $0x1], 0  ;;  %s1097_s18 = smov 0   ;;  %s1099_s19 = smov 0  }
   0x2   :  { %s1101_s20 = smov 0   ;;  %s1103_s21 = smov 0  }
   0x3   :  { %s1105_s22 = smov 0   ;;  %s1107_s23 = smov 0  }
   0x4 LB: > { %s864_s24 = sadd.s32 4294967295, %s1062_s23   ;;  %s865_s25 = sadd.s32 4294967294, %s1062_s23   ;;  %s1062_s23 = sphi %s1107_s23, %s18_s23   ;;  %s1058_s22 = sphi %s1105_s22, %s1261_s22   ;;  %s1054_s21 = sphi %s1103_s21, %s1260_s21   ;;  %s1050_s20 = sphi %s1101_s20, %s1259_s20   ;;  %s1046_s19 = sphi %s1099_s19, %s1258_s19   ;;  %s1042_s18 = sphi %s1097_s18, %s1257_s18  }
   0x5   : > { %s37_s26 = sadd.s32 1, %s1058_s22  ;;  %s180_s27 = sadd.s32 1, %s1050_s20 }
   0x6   : > { %p39_p0 = scmp.ge.s32.totalorder %s37_s26, 2  ;;  %p190_p1 = scmp.ne.s32.totalorder %s1050_s20, %s1046_s19 }
   0x7   : > { %p191_p2 = scmp.eq.s32.totalorder %s864_s24, 1  ;;  %p196_p3 = scmp.ne.s32.totalorder %s1046_s19, %s1042_s18 }
   0x8   : > { %s1263_s26 = smov (%p39_p0, %s37_s26), 0  ;;  %p197_p5 = scmp.eq.s32.totalorder %s865_s25, 1 }
   0x9   : > { %p1137_p4 = por %p191_p2, %p190_p1  ;;  %s173_s29 = ssub.s32 %s1058_s22, %s1263_s26 }
   0xa   : > { %p868_p6 = scmp.ge.s32.totalorder %s1062_s23, 1  ;;  %p178_p7 = scmp.eq.s32.totalorder %s173_s29, 0 }
   0xb   : > { %p1144_p8 = por %p197_p5, %p196_p3  ;;  %p263_p9 = scmp.lt.s32.totalorder %s1062_s23, 3 }
   0xc   : > { %s1150_s6 = scalar_select %p178_p7, %s1050_s20, %s180_s27  }
   0xd   : > { %p264_p10 = pnand %p868_p6, %p263_p9 }
   0xe   : > { %p319_p11 = scmp.lt.s32.totalorder (!%p264_p10), %s1054_s21, 1  ;;  %v354_v0 = vld [vmem:[%s1252_s3] sm:$0xff] (!%p264_p10)  ;;  %vm358_vm0 = vcmask (!%p264_p10), 64512   ;;  %v355_v2 = vld [vmem:[%s1252_s3 + $0x8] sm:$0xff] (!%p264_p10)  ;;  %s315_s11 = sand.u32 (!%p264_p10), 1, %s1046_s19   ;;  %vm704_vm1 = vcmask (!%p264_p10), 130048  }
   0xf   : > { %267 = sbr.rel (%p264_p10) target bundleno = 487 (0x1e7), region = 40  ;;  %907 = vmatprep.mubr.msk.f32.mxu0 (!%p264_p10), %vm358_vm0, %v354_v0  ;;  %v356_v4 = vld [vmem:[%s1253_s4] sm:$0xff] (!%p264_p10)  ;;  %s1203_s17 = scalar_lea.sflag (!%p264_p10), [#allocation3], %s315_s11 }
  0x10   : > { %910 = vmatprep.subr.mxu1 (!%p264_p10), %v356_v4  ;;  %s926_s12 = smul.u32 (!%p264_p10), 768, %s1054_s21  ;;  %s1064_s25 = smov (!%p264_p10), [#allocation2]  }
  0x11   : > { %911 = vmatpush3.msra.mxu1 (!%p264_p10), %v356_v4  ;;  %s988_s27 = sshll.u32 (!%p264_p10), %s1064_s25, 4  ;;  %s989_s27 = int_to_ptr.vmem [resolvable:$false] %s988_s27 }
  0x12   : > { %920 = vmatprep.subr.mxu1 (!%p264_p10), %v356_v4 }
  0x16   : > { %s1158_s9 = scalar_select %p319_p11, %s1054_s21, 1 }
  0x17   : > { %s1193_s21 = scalar_lea.hbm %s1254_s5, %s926_s12 }
  0x18   : > { %s871_s10 = sshll.u32 %s1158_s9, 3  ;;  %s892_s29 = sshll.u32 %s1158_s9, 4 }
  0x19   : > { %s340_s13 = scalar_lea.vmem %s1250_s1, %s871_s10  ;;  %s350_s24 = scalar_lea.vmem %s1251_s2, %s871_s10 }
  0x1a   : > { %v357_v1 = vld [vmem:[%s340_s13] sm:$0xff]  ;;  %s329_s10 = scalar_lea.vmem %s1249_s0, %s892_s29  ;;  %s925_s9 = smul.u32 48, %s315_s11 }
  0x1b   : > { %905 = vmatprep.subr.mxu0 %v357_v1  ;;  %v523_v3 = vld [vmem:[%s350_s24] sm:$0xff]  ;;  %v353_v12 = vld [vmem:[%s329_s10 + $0x8] sm:$0xff]  ;;  %s990_s29 = scalar_lea.vmem %s989_s27, 1536 }
  0x1c   : > { %906 = vmatpush3.msra.mxu0 %v357_v1  ;;  %v352_v16 = vld [vmem:[%s329_s10] sm:$0xff]  ;;  %s317_s13 = scalar_lea.vmem [#allocation2], %s925_s9 }
  0x1d   : > { %908 = vmatmul.mubr.msk.f32.vlgmr.msra.gmra.mrb[0].mxu0 %vm358_vm0, %v355_v2  ;;  %915 = vmatprep.subr.mxu0 %v523_v3  ;;  %s742_s14 = sshll.u32 %s317_s13, 4  ;;  %s1195_s14 = int_to_ptr.vmem [resolvable:$true] %s742_s14 }
  0x1e   : > { %916 = vmatpush3.msra.mxu0 %v523_v3  ;;  %917 = vmatprep.mubr.msk.f32.mxu0 %vm358_vm0, %v354_v0  ;;  %s984_s24 = scalar_lea.vmem %s1195_s14, 768  ;;  %p991_p1 = scmp.lt.s32.totalorder %s1195_s14, %s989_s27 }
  0x1f   : > { %p985_p12 = scmp.ne.s32.totalorder %s1195_s14, %s984_s24  ;;  %p992_p2 = scmp.lt.s32.totalorder %s990_s29, %s984_s24 }
  0x21   : > { %918 = vmatmul.mubr.msk.f32.vlgmr.msra.gmra.mrb[2].mxu0 %vm358_vm0, %v355_v2  ;;  %p986_p13 = pnand %p985_p12, %p1137_p4  ;;  %p993_p3 = por %p992_p2, %p991_p1 }
  0x23   : > { %p987_p0 = pneg %p986_p13 }
  0x25   : > { %p994_p5 = pnand %p993_p3, %p987_p0 }
  0xf0   : > { %v909_v5 = vpop.f32.mrb[0].mxu0 }
  0xf1   : > { %v431_v6 = vpop.f32.mrb[1].mxu0 }
  0xf2   : > { %912 = vmatprep.mubr.msk.f32.mxu1 %vm358_vm0, %v431_v6 }
  0xf3   : > { %913 = vmatmul.mubr.msk.f32.vlgmr.msra.gmra.mrb[0].mxu1 %vm358_vm0, %v909_v5 }
  0xf4   : > { %v919_v7 = vpop.f32.mrb[2].mxu0  ;;  %921 = vmatpush3.msra.mxu1 %v356_v4 }
  0xf5   : > { %v590_v8 = vpop.f32.mrb[3].mxu0 }
  0xf6   : > { %922 = vmatprep.mubr.msk.f32.mxu1 %vm358_vm0, %v590_v8 }
  0xf7   : > { %923 = vmatmul.mubr.msk.f32.vlgmr.msra.gmra.mrb[2].mxu1 %vm358_vm0, %v919_v7 }
 0x1c6   : > { %v914_v9 = vpop.f32.mrb[0].mxu1 }
 0x1c7   : > { %v878_v10 = vadd.f32 -128.0, %v914_v9  ;;  %v512_v11 = vpop.f32.mrb[1].mxu1 }
 0x1c8   : > { %v877_v13 = vadd.f32 -128.0, %v512_v11 }
 0x1c9   : > { %v687_v14 = vmul.f32 0.344136, %v878_v10  ;;  %v695_v15 = vmul.f32 1.772, %v878_v10 }
 0x1ca   : > { %v686_v17 = vmul.f32 0.344136, %v877_v13  ;;  %v694_v18 = vmul.f32 1.772, %v877_v13  ;;  %v924_v19 = vpop.f32.mrb[2].mxu1 }
 0x1cb   : > { %v689_v20 = vsub.f32 %v353_v12, %v687_v14  ;;  %v697_v21 = vadd.f32 %v695_v15, %v353_v12  ;;  %v884_v22 = vadd.f32 -128.0, %v924_v19  ;;  %v671_v23 = vpop.f32.mrb[3].mxu1 }
 0x1cc   : > { %v688_v24 = vsub.f32 %v352_v16, %v686_v17  ;;  %v696_v25 = vadd.f32 %v694_v18, %v352_v16  ;;  %v883_v26 = vadd.f32 -128.0, %v671_v23 }
 0x1cd   : > { %v717_v27 = vmax.f32 %v697_v21, 0.0  ;;  %v683_v28 = vmul.f32 1.402, %v884_v22  ;;  %v691_v29 = vmul.f32 0.714136, %v884_v22 }
 0x1ce   : > { %v716_v30 = vmax.f32 %v696_v25, 0.0  ;;  %v682_v31 = vmul.f32 1.402, %v883_v26  ;;  %v690_v32 = vmul.f32 0.714136, %v883_v26 }
 0x1cf   : > { %v719_v33 = vmin.f32 %v717_v27, 255.0  ;;  %v685_v34 = vadd.f32 %v683_v28, %v353_v12  ;;  %v693_v35 = vsub.f32 %v689_v20, %v691_v29 }
 0x1d0   : > { %v718_v36 = vmin.f32 %v716_v30, 255.0  ;;  %v684_v37 = vadd.f32 %v682_v31, %v352_v16  ;;  %v692_v38 = vsub.f32 %v688_v24, %v690_v32 }
 0x1d1   : > { %v721_v39 = vmul.f32 0.003921569, %v719_v33  ;;  %v699_v40 = vmax.f32 %v685_v34, 0.0  ;;  %v708_v41 = vmax.f32 %v693_v35, 0.0 }
 0x1d2   : > { %v720_v42 = vmul.f32 0.003921569, %v718_v36  ;;  %v698_v43 = vmax.f32 %v684_v37, 0.0  ;;  %v707_v44 = vmax.f32 %v692_v38, 0.0 }
 0x1d3   : > { %888 = vst.msk [vmem:[%s317_s13 + $0x28] sm:$0xff] %vm704_vm1, %v721_v39  ;;  %v701_v45 = vmin.f32 %v699_v40, 255.0  ;;  %v710_v46 = vmin.f32 %v708_v41, 255.0 }
 0x1d4   : > { %887 = vst.msk [vmem:[%s317_s13 + $0x20] sm:$0xff] %vm704_vm1, %v720_v42  ;;  %v700_v47 = vmin.f32 %v698_v43, 255.0  ;;  %v709_v48 = vmin.f32 %v707_v44, 255.0 }
 0x1d5   : > { %v703_v49 = vmul.f32 0.003921569, %v701_v45  ;;  %v712_v50 = vmul.f32 0.003921569, %v710_v46 }
 0x1d6   : > { %v702_v51 = vmul.f32 0.003921569, %v700_v47  ;;  %v711_v52 = vmul.f32 0.003921569, %v709_v48 }
 0x1d7   : > { %706 = vst.msk [vmem:[%s317_s13 + $0x8] sm:$0xff] %vm704_vm1, %v703_v49  ;;  %886 = vst.msk [vmem:[%s317_s13 + $0x18] sm:$0xff] %vm704_vm1, %v712_v50 }
 0x1d8   : > { %705 = vst.msk [vmem:[%s317_s13] sm:$0xff] %vm704_vm1, %v702_v51  ;;  %885 = vst.msk [vmem:[%s317_s13 + $0x10] sm:$0xff] %vm704_vm1, %v711_v52 }
 0x1d9   : > { %997 = shalt.err (!%p994_p5)
}
 0x1da   : > { %s998_s7 = scalar_lea.hbm %s1193_s21, 768  ;;  %s1002_s11 = scalar_lea.hbm %s1254_s5, 1536 }
 0x1db   : > { %p999_p6 = scmp.ne.s32.totalorder %s1193_s21, %s998_s7  ;;  %p1003_p10 = scmp.lt.u32.totalorder %s1193_s21, %s1254_s5 }
 0x1dc   : > { %p1004_p11 = scmp.lt.u32.totalorder %s1002_s11, %s998_s7  ;;  %p1006_p13 = scmp.lt.u32.totalorder %s998_s7, %s1193_s21 }
 0x1dd   : > { %p1000_p7 = pnand %p999_p6, %p1137_p4 }
 0x1de   : > { %p1005_p12 = por %p1004_p11, %p1003_p10 }
 0x1df   : > { %p1001_p9 = pneg %p1000_p7 }
 0x1e0   : > { %p1007_p0 = por %p1006_p13, %p1005_p12 }
 0x1e2   : > { %p1008_p1 = pnand %p1007_p0, %p1001_p9 }
 0x1e4   : > { %1011 = shalt.err (!%p1008_p1)
}
 0x1e5   : > { %s1065_s13 = smov 128   ;;  %s1066_s15 = smov 8  }
 0x1e6   : > { %927 = dma.vmem_to_hbm [thread:$0]  (%p1137_p4), %s1195_s14, 768, %s1193_s21, %s1203_s17, %s1065_s13, %s1065_s13, %s1066_s15  }
 0x1e7 PF: > { %p933_p2 = scmp.ge.s32.totalorder %s1062_s23, 2  ;;  %s757_s16 = sand.u32 1, %s1042_s18  }
 0x1e8   : > { %s758_s24 = scalar_lea.sflag [#allocation3], %s757_s16 }
 0x1e9   : > { %p930_p3 = pnand %p933_p2, %p1144_p8 }
 0x1eb   : > { %1037 = dma.done.wait (!%p930_p3), %s758_s24, 768  }
 0x1ec   : > { %1039 = vsyncadd (!%p930_p3), %s758_s24, 4294966528  ;;  %s18_s23 = sadd.s32 1, %s1062_s23   ;;  %s1257_s18 = smov %s1046_s19 }
 0x1ed   : > { %p15_p5 = scmp.ge.s32.totalorder %s18_s23, 4   ;;  %s1258_s19 = smov %s1050_s20 }
 0x1ee   : > { %s1259_s20 = smov %s1150_s6  ;;  %s1260_s21 = smov %s1058_s22 }
 0x1ef   : > { %s1261_s22 = smov %s1263_s26  ;;  %17 = sbr.rel (!%p15_p5) target bundleno = 4 (0x4), region = 83 }
 0x1f6   :  { %763 = vsyncpa [#allocation3], 1 }
 0x1f7   :  { %765 = vsyncpa [#allocation3 + $0x1], 1 }

// kernel: diff_jpeg.5
= control target key start
LH: loop header
LB: loop body
LE: loop exit
PB: predicated region body
PF: predicated region fallthrough
CT: control target
= control target key end

     0   :  { %11 = vsyncpa [#allocation3], 0  ;;  %s1306_s0 = inlined_call_operand.hbm [shape: f32[2,3,16,16], index: 0, kind: input, shape index: {}]   ;;  %s1307_s1 = inlined_call_operand.vmem [shape: f32[8,16], index: 1, kind: input, shape index: {}]   ;;  %s1308_s2 = inlined_call_operand.vmem [shape: f32[16,8], index: 2, kind: input, shape index: {}]   ;;  %s1309_s3 = inlined_call_operand.vmem [shape: f32[2,16,16], index: 3, kind: output, shape index: {0}]   ;;  %s1310_s4 = inlined_call_operand.vmem [shape: f32[2,8,8], index: 4, kind: output, shape index: {1}]   ;;  %s1311_s5 = inlined_call_operand.vmem [shape: f32[2,8,8], index: 5, kind: output, shape index: {2}]  }
   0x1   :  { %13 = vsyncpa [#allocation3 + $0x1], 0  ;;  %s1155_s18 = smov 0   ;;  %s1157_s19 = smov 0  }
   0x2   :  { %s1159_s20 = smov 0   ;;  %s1161_s21 = smov 0  }
   0x3   :  { %s1163_s22 = smov 0   ;;  %s1165_s23 = smov 0  }
   0x4 LB: > { %s901_s24 = sadd.s32 4294967295, %s1117_s23   ;;  %s38_s25 = sadd.s32 1, %s1113_s22  ;;  %s1117_s23 = sphi %s1165_s23, %s19_s23   ;;  %s1113_s22 = sphi %s1163_s22, %s1318_s22   ;;  %s1109_s21 = sphi %s1161_s21, %s1317_s21   ;;  %s1105_s20 = sphi %s1159_s20, %s1316_s20   ;;  %s1101_s19 = sphi %s1157_s19, %s1315_s19   ;;  %s1097_s18 = sphi %s1155_s18, %s1314_s18  }
   0x5   : > { %p40_p0 = scmp.ge.s32.totalorder %s38_s25, 2  ;;  %s49_s26 = sadd.s32 1, %s1105_s20 }
   0x6   : > { %p56_p1 = scmp.ne.s32.totalorder %s1105_s20, %s1101_s19  ;;  %p57_p2 = scmp.eq.s32.totalorder %s1117_s23, 0 }
   0x7   : > { %s1320_s25 = smov (%p40_p0, %s38_s25), 0  ;;  %p62_p4 = scmp.ne.s32.totalorder %s1101_s19, %s1097_s18 }
   0x8   : > { %p58_p3 = por %p57_p2, %p56_p1  ;;  %s42_s27 = ssub.s32 %s1113_s22, %s1320_s25 }
   0x9   : > { %p63_p5 = scmp.eq.s32.totalorder %s901_s24, 0  ;;  %p47_p6 = scmp.eq.s32.totalorder %s42_s27, 0 }
   0xa   : > { %p983_p8 = scmp.lt.s32.totalorder %s1117_s23, 2  ;;  %s224_s30 = sand.u32 1, %s1105_s20  }
   0xb   : > { %p1194_p7 = por %p63_p5, %p62_p4  ;;  %s975_s6 = smul.u32 768, %s1113_s22 }
   0xc   : > { %s1200_s29 = scalar_select %p47_p6, %s1105_s20, %s49_s26  }
   0xd   : > { %s974_s7 = smul.u32 48, %s224_s30  ;;  %s1207_s10 = scalar_lea.hbm %s1306_s0, %s975_s6 }
   0xe   : > { %p1209_p9 = pnand %p983_p8, %p58_p3  ;;  %s1215_s14 = scalar_lea.sflag [#allocation3], %s224_s30 }
   0xf   : > { %s228_s12 = scalar_lea.vmem [#allocation2], %s974_s7  ;;  %s1037_s15 = scalar_lea.hbm %s1207_s10, 768 }
  0x10   : > { %s238_s13 = sshll.u32 %s228_s12, 4  ;;  %p1038_p10 = scmp.ne.s32.totalorder %s1207_s10, %s1037_s15  ;;  %s1213_s13 = int_to_ptr.vmem [resolvable:$true] %s238_s13 }
  0x11   : > { %p1039_p11 = pneg %p1209_p9  ;;  %s1042_s18 = scalar_lea.hbm %s1306_s0, 1536 }
  0x12   : > { %p1043_p0 = scmp.lt.u32.totalorder %s1207_s10, %s1306_s0  ;;  %p1044_p1 = scmp.lt.u32.totalorder %s1042_s18, %s1037_s15 }
  0x13   : > { %p1040_p12 = pnand %p1039_p11, %p1038_p10  ;;  %p1046_p3 = scmp.lt.u32.totalorder %s1037_s15, %s1207_s10 }
  0x14   : > { %p1045_p2 = por %p1044_p1, %p1043_p0 }
  0x15   : > { %p1041_p13 = pneg %p1040_p12 }
  0x16   : > { %p1047_p4 = por %p1046_p3, %p1045_p2 }
  0x18   : > { %p1048_p5 = pnand %p1047_p4, %p1041_p13 }
  0x1a   : > { %1051 = shalt.err (!%p1048_p5)
}
  0x1b   : > { %s1052_s27 = scalar_lea.vmem %s1213_s13, 768  ;;  %s1119_s30 = smov [#allocation2]  }
  0x1c   : > { %p1053_p6 = scmp.ne.s32.totalorder %s1213_s13, %s1052_s27  ;;  %s1057_s6 = sshll.u32 %s1119_s30, 4  ;;  %s1058_s6 = int_to_ptr.vmem [resolvable:$false] %s1057_s6 }
  0x1d   : > { %s1059_s7 = scalar_lea.vmem %s1058_s6, 1536  ;;  %p1060_p12 = scmp.lt.s32.totalorder %s1213_s13, %s1058_s6 }
  0x1e   : > { %p1055_p8 = pnand %p1053_p6, %p1039_p11  ;;  %p1061_p0 = scmp.lt.s32.totalorder %s1059_s7, %s1052_s27 }
  0x20   : > { %p1056_p10 = pneg %p1055_p8  ;;  %p1062_p1 = por %p1061_p0, %p1060_p12 }
  0x22   : > { %p1063_p2 = pnand %p1062_p1, %p1056_p10 }
  0x24   : > { %1066 = shalt.err (!%p1063_p2)
}
  0x25   : > { %s1120_s8 = smov 128   ;;  %s1121_s9 = smov 8  }
  0x26   : > { %982 = dma.hbm_to_vmem [thread:$0]  (!%p1209_p9), %s1207_s10, 768, %s1213_s13, %s1215_s14, %s1120_s8, %s1120_s8, %s1121_s9  }
  0x27   : > { %p906_p11 = scmp.ge.s32.totalorder %s1117_s23, 1  ;;  %p246_p13 = scmp.lt.s32.totalorder %s1117_s23, 3 }
  0x29   : > { %p247_p3 = pnand %p906_p11, %p246_p13 }
  0x2a   : > { %s252_s12 = sand.u32 (!%p247_p3), 1, %s1101_s19  }
  0x2b   : > { %250 = sbr.rel (%p247_p3) target bundleno = 499 (0x1f3), region = 32  ;;  %s253_s16 = scalar_lea.sflag (!%p247_p3), [#allocation3], %s252_s12 }
  0x2c   : > { %s976_s15 = smul.u32 (!%p247_p3), 48, %s252_s12 }
  0x2e   : > { %s256_s17 = scalar_lea.vmem (!%p247_p3), [#allocation2], %s976_s15 }
  0x32   : > { %1092 = dma.done.wait (%p1194_p7), %s253_s16, 768  }
  0x33   : > { %1094 = vsyncadd (%p1194_p7), %s253_s16, 4294966528  ;;  %v1122_v0 = vmov 0.0|0.0   ;;  %vm1123_vm0 = vmmov 0   ;;  %v1124_v1 = vmov 0.0   ;;  %v344_v2 = vld [vmem:[%s256_s17] sm:$0xff]  ;;  %v345_v3 = vld [vmem:[%s256_s17 + $0x8] sm:$0xff] }
  0x34   : > { %962 = vmatprep.subr.bf16.mxu0 %v1122_v0  ;;  %938 = vmatprep.mubr.msk.f32.mxu0 %vm1123_vm0, %v1124_v1  ;;  %v911_v4 = vld [vmem:[%s256_s17 + $0x10] sm:$0xff]  ;;  %v346_v5 = vmul.f32 255.0, %v344_v2  ;;  %v347_v6 = vmul.f32 255.0, %v345_v3  ;;  %v912_v7 = vld [vmem:[%s256_s17 + $0x18] sm:$0xff]  ;;  %v913_v9 = vld [vmem:[%s256_s17 + $0x20] sm:$0xff]  ;;  %vm368_vm1 = vcmask 130048  }
  0x35   : > { %965 = vmatprep.subr.bf16.mxu1 %v1122_v0  ;;  %945 = vmatprep.mubr.msk.f32.mxu1 %vm1123_vm0, %v1124_v1  ;;  %v351_v8 = vmul.f32 255.0, %v911_v4  ;;  %v914_v10 = vld [vmem:[%s256_s17 + $0x28] sm:$0xff]  ;;  %v352_v11 = vmul.f32 255.0, %v912_v7  ;;  %v356_v12 = vmul.f32 255.0, %v913_v9  ;;  %v396_v14 = vld [vmem:[%s1308_s2] sm:$0xff]  ;;  %p312_p7 = scmp.lt.s32.totalorder %s1109_s21, 1 }
  0x36   : > { %v357_v13 = vmul.f32 255.0, %v914_v10  ;;  %v397_v15 = vld [vmem:[%s1308_s2 + $0x8] sm:$0xff]  ;;  %v358_v16 = vmul.f32 0.299, %v346_v5  ;;  %v359_v17 = vmul.f32 0.299, %v347_v6 }
  0x37   : > { %v360_v18 = vmul.f32 0.587, %v351_v8  ;;  %v966_v19 = vpack.c.bf16 %v397_v15, %v396_v14  ;;  %v361_v20 = vmul.f32 0.587, %v352_v11  ;;  %v364_v21 = vmul.f32 0.114, %v356_v12 }
  0x38   : > { %v365_v22 = vmul.f32 0.114, %v357_v13  ;;  %v371_v24 = vmul.f32 -0.168736, %v346_v5  ;;  %v372_v25 = vmul.f32 -0.168736, %v347_v6 }
  0x39   : > { %v362_v23 = vadd.f32 %v360_v18, %v358_v16  ;;  %v373_v26 = vmul.f32 0.331264, %v351_v8  ;;  %967 = vmatpush3.bf16.msra.mxu1 %v966_v19  ;;  %v363_v27 = vadd.f32 %v361_v20, %v359_v17  ;;  %v374_v28 = vmul.f32 0.331264, %v352_v11  ;;  %v395_v52 = vld [vmem:[%s1307_s1] sm:$0xff]  ;;  %s1322_s21 = smov (!%p312_p7, %s1109_s21), 1 }
  0x3a   : > { %v377_v29 = vmul.f32 0.5, %v356_v12  ;;  %v378_v30 = vmul.f32 0.5, %v357_v13  ;;  %971 = vmatprep.subr.bf16.mxu1 %v1122_v0  ;;  %v383_v33 = vmul.f32 0.5, %v346_v5  ;;  %v384_v34 = vmul.f32 0.5, %v347_v6  ;;  %s921_s24 = sshll.u32 %s1322_s21, 4  ;;  %s909_s6 = sshll.u32 %s1322_s21, 3 }
  0x3b   : > { %v366_v31 = vadd.f32 %v364_v21, %v362_v23  ;;  %v375_v32 = vsub.f32 %v371_v24, %v373_v26  ;;  %v367_v35 = vadd.f32 %v365_v22, %v363_v27  ;;  %v376_v36 = vsub.f32 %v372_v25, %v374_v28  ;;  %s322_s30 = scalar_lea.vmem %s1309_s3, %s921_s24  ;;  %s333_s9 = scalar_lea.vmem %s1310_s4, %s909_s6 }
  0x3c   : > { %v385_v37 = vmul.f32 0.418688, %v351_v8  ;;  %v386_v38 = vmul.f32 0.418688, %v352_v11  ;;  %v389_v40 = vmul.f32 0.081312, %v356_v12  ;;  %s343_s16 = scalar_lea.vmem %s1311_s5, %s909_s6 }
  0x3d   : > { %v379_v39 = vadd.f32 %v377_v29, %v375_v32  ;;  %v390_v41 = vmul.f32 0.081312, %v357_v13  ;;  %v380_v42 = vadd.f32 %v378_v30, %v376_v36  ;;  %369 = vst.msk [vmem:[%s322_s30] sm:$0xff] %vm368_vm1, %v366_v31  ;;  %370 = vst.msk [vmem:[%s322_s30 + $0x8] sm:$0xff] %vm368_vm1, %v367_v35  ;;  %vm544_vm2 = vcmask 64512  }
  0x3e   : > { %v387_v43 = vsub.f32 %v383_v33, %v385_v37  ;;  %v388_v44 = vsub.f32 %v384_v34, %v386_v38 }
  0x3f   : > { %v381_v45 = vadd.f32 128.0, %v379_v39  ;;  %v382_v46 = vadd.f32 128.0, %v380_v42 }
  0x40   : > { %v391_v47 = vsub.f32 %v387_v43, %v389_v40  ;;  %v392_v48 = vsub.f32 %v388_v44, %v390_v41 }
  0x41   : > { %v963_v49 = vpack.c.bf16 %v382_v46, %v381_v45 }
  0x42   : > { %v393_v50 = vadd.f32 128.0, %v391_v47  ;;  %v394_v51 = vadd.f32 128.0, %v392_v48 }
  0x43   : > { %964 = vmatpush3.bf16.msra.mxu0 %v963_v49 }
  0x44   : > { %v969_v53 = vpack.c.bf16 %v394_v51, %v393_v50  ;;  %968 = vmatprep.subr.bf16.mxu0 %v1122_v0 }
  0x46   : > { %939 = vmatmul.mubr.msk.f32.vlgmr.msra.gmra.mrb[0].mxu0 %vm368_vm1, %v395_v52 }
  0x47   : > { %970 = vmatpush3.bf16.msra.mxu0 %v969_v53  ;;  %952 = vmatprep.mubr.msk.f32.mxu0 %vm1123_vm0, %v1124_v1 }
  0x4a   : > { %953 = vmatmul.mubr.msk.f32.vlgmr.msra.gmra.mrb[2].mxu0 %vm368_vm1, %v395_v52 }
 0x119   : > { %v467_v54 = vpop.f32.mrb[0].mxu0 }
 0x11a   : > { %v940_v55 = vpop.f32.mrb[1].mxu0  ;;  %946 = vmatmul.mubr.msk.f32.vlgmr.msra.gmra.mrb[0].mxu1 %vm368_vm1, %v467_v54 }
 0x11b   : > { %973 = vmatpush3.bf16.msra.mxu1 %v966_v19  ;;  %959 = vmatprep.mubr.msk.f32.mxu1 %vm1123_vm0, %v1124_v1 }
 0x11d   : > { %v612_v56 = vpop.f32.mrb[2].mxu0 }
 0x11e   : > { %v954_v57 = vpop.f32.mrb[3].mxu0  ;;  %960 = vmatmul.mubr.msk.f32.vlgmr.msra.gmra.mrb[2].mxu1 %vm368_vm1, %v612_v56 }
 0x1ed   : > { %v540_v58 = vpop.f32.mrb[0].mxu1 }
 0x1ee   : > { %545 = vst.msk [vmem:[%s333_s9] sm:$0xff] %vm544_vm2, %v540_v58  ;;  %v947_v59 = vpop.f32.mrb[1].mxu1 }
 0x1f1   : > { %v685_v60 = vpop.f32.mrb[2].mxu1 }
 0x1f2   : > { %689 = vst.msk [vmem:[%s343_s16] sm:$0xff] %vm544_vm2, %v685_v60  ;;  %v961_v61 = vpop.f32.mrb[3].mxu1 }
 0x1f3 PF: > { %s19_s23 = sadd.s32 1, %s1117_s23   ;;  %s1314_s18 = smov %s1101_s19 }
 0x1f4   : > { %p16_p9 = scmp.ge.s32.totalorder %s19_s23, 4   ;;  %s1315_s19 = smov %s1105_s20 }
 0x1f5   : > { %s1316_s20 = smov %s1200_s29  ;;  %s1317_s21 = smov %s1113_s22 }
 0x1f6   : > { %s1318_s22 = smov %s1320_s25  ;;  %18 = sbr.rel (!%p16_p9) target bundleno = 4 (0x4), region = 98 }
 0x1fd   :  { %778 = vsyncpa [#allocation3], 1 }
 0x1fe   :  { %780 = vsyncpa [#allocation3 + $0x1], 1 }

// kernel: diff_jpeg.6
= control target key start
LH: loop header
LB: loop body
LE: loop exit
PB: predicated region body
PF: predicated region fallthrough
CT: control target
= control target key end

     0   :  { %s977_s24 = smov 0   ;;  %s979_s25 = smov 0   ;;  %s1063_s0 = inlined_call_operand.vmem [shape: f32[2,16,16], index: 0, kind: input, shape index: {}]   ;;  %s1064_s1 = inlined_call_operand.vmem [shape: f32[16,16], index: 1, kind: input, shape index: {}, may-alias: {1,3}]   ;;  %s1065_s2 = inlined_call_operand.vmem [shape: f32[16,16], index: 2, kind: input, shape index: {}, may-alias: {2,4}]   ;;  %s1066_s3 = inlined_call_operand.vmem [shape: f32[16,16], index: 3, kind: input, shape index: {}, may-alias: {1,3}]   ;;  %s1067_s4 = inlined_call_operand.vmem [shape: f32[16,16], index: 4, kind: input, shape index: {}, may-alias: {2,4}]   ;;  %s1068_s5 = inlined_call_operand.vmem [shape: f32[16,16], index: 5, kind: input, shape index: {}]   ;;  %s1069_s6 = inlined_call_operand.vmem [shape: f32[16,16], index: 6, kind: input, shape index: {}]   ;;  %s1070_s7 = inlined_call_operand.vmem [shape: f32[2,16,16], index: 7, kind: output, shape index: {}]  }
   0x1   :  { %s981_s26 = smov 0  }
   0x2 LB: > { %s36_s27 = sadd.s32 1, %s931_s25  ;;  %p808_p0 = scmp.ge.s32.totalorder %s935_s26, 1  ;;  %s935_s26 = sphi %s981_s26, %s17_s26   ;;  %s931_s25 = sphi %s979_s25, %s1072_s25   ;;  %s927_s24 = sphi %s977_s24, %s1071_s24  }
   0x3   : > { %p38_p1 = scmp.ge.s32.totalorder %s36_s27, 2  ;;  %p272_p2 = scmp.lt.s32.totalorder %s935_s26, 3 }
   0x5   : > { %s1074_s27 = smov (%p38_p1, %s36_s27), 0  ;;  %p273_p3 = pnand %p808_p0, %p272_p2 }
   0x6   : > { %p319_p4 = scmp.lt.s32.totalorder (!%p273_p3), %s927_s24, 1  ;;  %v348_v0 = vld [vmem:[%s1064_s1] sm:$0xff] (!%p273_p3)  ;;  %vm350_vm0 = vcmask (!%p273_p3), 130048   ;;  %v433_v2 = vld [vmem:[%s1067_s4 + $0x8] sm:$0xff] (!%p273_p3) }
   0x7   : > { %276 = sbr.rel (%p273_p3) target bundleno = 903 (0x387), region = 48  ;;  %v432_v1 = vld [vmem:[%s1067_s4] sm:$0xff] (!%p273_p3)  ;;  %847 = vmatprep.mubr.msk.f32.mxu0 (!%p273_p3), %vm350_vm0, %v348_v0  ;;  %v349_v9 = vld [vmem:[%s1064_s1 + $0x8] sm:$0xff] (!%p273_p3) }
   0x8   : > { %v875_v3 = vpack.c.bf16 (!%p273_p3), %v433_v2, %v432_v1  ;;  %v533_v12 = vld [vmem:[%s1065_s2] sm:$0xff] (!%p273_p3)  ;;  %v617_v14 = vld [vmem:[%s1066_s3 + $0x8] sm:$0xff] (!%p273_p3) }
   0x9   : > { %v616_v13 = vld [vmem:[%s1066_s3] sm:$0xff] (!%p273_p3)  ;;  %v516_v16 = vld [vmem:[%s1068_s5 + $0x8] sm:$0xff] (!%p273_p3) }
   0xa   : > { %876 = vmatprep.subr.bf16.mxu1 (!%p273_p3), %v875_v3  ;;  %v883_v15 = vpack.c.bf16 (!%p273_p3), %v617_v14, %v616_v13  ;;  %v515_v17 = vld [vmem:[%s1068_s5] sm:$0xff] (!%p273_p3)  ;;  %v530_v30 = vld [vmem:[%s1069_s6 + $0x8] sm:$0xff] (!%p273_p3) }
   0xb   : > { %878 = vmatpush3.bf16.msra.mxu1 (!%p273_p3), %v875_v3  ;;  %v529_v32 = vld [vmem:[%s1069_s6] sm:$0xff] (!%p273_p3)  ;;  %v534_v37 = vld [vmem:[%s1065_s2 + $0x8] sm:$0xff] (!%p273_p3) }
   0xc   : > { %884 = vmatprep.subr.bf16.mxu1 (!%p273_p3), %v883_v15 }
   0xe   : > { %s1076_s24 = smov (!%p319_p4, %s927_s24), 1 }
   0xf   : > { %s825_s11 = sshll.u32 %s1076_s24, 4 }
  0x10   : > { %s329_s14 = scalar_lea.vmem %s1063_s0, %s825_s11  ;;  %s342_s17 = scalar_lea.vmem %s1070_s7, %s825_s11 }
  0x11   : > { %v344_v4 = vld [vmem:[%s329_s14] sm:$0xff]  ;;  %v345_v5 = vld [vmem:[%s329_s14 + $0x8] sm:$0xff] }
  0x12   : > { %v813_v6 = vadd.f32 -128.0, %v344_v4  ;;  %v814_v7 = vadd.f32 -128.0, %v345_v5 }
  0x14   : > { %v871_v8 = vpack.c.bf16 %v814_v7, %v813_v6 }
  0x16   : > { %872 = vmatprep.subr.bf16.mxu0 %v871_v8 }
  0x17   : > { %874 = vmatpush3.bf16.msra.mxu0 %v871_v8 }
  0x1a   : > { %848 = vmatmul.mubr.msk.f32.vlgmr.msra.gmra.mrb[0].mxu0 %vm350_vm0, %v349_v9 }
  0x1b   : > { %861 = vmatprep.mubr.msk.f32.mxu0 %vm350_vm0, %v533_v12 }
  0xed   : > { %v849_v10 = vpop.f32.mrb[0].mxu0 }
  0xee   : > { %v423_v11 = vpop.f32.mrb[1].mxu0 }
  0xef   : > { %854 = vmatprep.mubr.msk.f32.mxu1 %vm350_vm0, %v423_v11 }
  0xf0   : > { %855 = vmatmul.mubr.msk.f32.vlgmr.msra.gmra.mrb[0].mxu1 %vm350_vm0, %v849_v10 }
  0xf1   : > { %886 = vmatpush3.bf16.msra.mxu1 %v883_v15 }
 0x1c3   : > { %v856_v18 = vpop.f32.mrb[0].mxu1 }
 0x1c4   : > { %v518_v19 = vmul.f32 %v856_v18, %v516_v16  ;;  %v506_v20 = vpop.f32.mrb[1].mxu1 }
 0x1c5   : > { %v517_v21 = vmul.f32 %v515_v17, %v506_v20 }
 0x1c6   : > { %v888_v22 = vround.rtne.f32 %v518_v19 }
 0x1c7   : > { %v887_v23 = vround.rtne.f32 %v517_v21 }
 0x1c8   : > { %v522_v24 = vsub.f32 %v518_v19, %v888_v22 }
 0x1c9   : > { %v521_v25 = vsub.f32 %v517_v21, %v887_v23 }
 0x1ca   : > { %v524_v26 = vmul.f32 %v522_v24, %v522_v24 }
 0x1cb   : > { %v523_v27 = vmul.f32 %v521_v25, %v521_v25 }
 0x1cc   : > { %v526_v28 = vmul.f32 %v524_v26, %v522_v24 }
 0x1cd   : > { %v525_v29 = vmul.f32 %v523_v27, %v521_v25 }
 0x1ce   : > { %v528_v31 = vadd.f32 %v888_v22, %v526_v28 }
 0x1cf   : > { %v527_v33 = vadd.f32 %v887_v23, %v525_v29 }
 0x1d0   : > { %v532_v34 = vmul.f32 %v530_v30, %v528_v31 }
 0x1d1   : > { %v531_v35 = vmul.f32 %v529_v32, %v527_v33 }
 0x1d3   : > { %v879_v36 = vpack.c.bf16 %v532_v34, %v531_v35 }
 0x1d5   : > { %880 = vmatprep.subr.bf16.mxu0 %v879_v36 }
 0x1d6   : > { %882 = vmatpush3.bf16.msra.mxu0 %v879_v36 }
 0x1d9   : > { %862 = vmatmul.mubr.msk.f32.vlgmr.msra.gmra.mrb[2].mxu0 %vm350_vm0, %v534_v37 }
 0x2ac   : > { %v863_v38 = vpop.f32.mrb[2].mxu0 }
 0x2ad   : > { %v607_v39 = vpop.f32.mrb[3].mxu0 }
 0x2ae   : > { %868 = vmatprep.mubr.msk.f32.mxu1 %vm350_vm0, %v607_v39 }
 0x2af   : > { %869 = vmatmul.mubr.msk.f32.vlgmr.msra.gmra.mrb[2].mxu1 %vm350_vm0, %v863_v38 }
 0x382   : > { %v870_v40 = vpop.f32.mrb[2].mxu1 }
 0x383   : > { %v696_v41 = vadd.f32 128.0, %v870_v40  ;;  %v690_v42 = vpop.f32.mrb[3].mxu1 }
 0x384   : > { %v691_v43 = vadd.f32 128.0, %v690_v42 }
 0x385   : > { %700 = vst.msk [vmem:[%s342_s17 + $0x8] sm:$0xff] %vm350_vm0, %v696_v41 }
 0x386   : > { %699 = vst.msk [vmem:[%s342_s17] sm:$0xff] %vm350_vm0, %v691_v43 }
 0x387 PF: > { %s17_s26 = sadd.s32 1, %s935_s26   ;;  %s1071_s24 = smov %s931_s25 }
 0x388   : > { %p14_p5 = scmp.ge.s32.totalorder %s17_s26, 4   ;;  %s1072_s25 = smov %s1074_s27 }
 0x38a   :  { %16 = sbr.rel (!%p14_p5) target bundleno = 2 (0x2), region = 78 }

</bundles_post_ra>
